<compile_context>
chip_gen: v5e
topology: v5e:2x2
jax: 0.10.0
libtpu: 0.0.40
codegen_flags: <defaults>
</compile_context>

<pallas_src>
import functools

import jax
import jax.numpy as jnp
from jax.experimental import pallas as pl
from jax.experimental.pallas import tpu as pltpu


def _mhastp_kernel(x_ref, w1_ref, b1_ref, w2_ref, o_ref, *, bt, use_mxu):
    # x_ref:  (Bt, 1, d_model, T)   one head, Bt batch rows, exact (unpadded) T
    # w1_ref: (1, bn, d_model)      first k=1 conv weight
    # b1_ref: (1, bn, 1)            first conv bias
    # w2_ref: (1, bn, 1)            second conv weight (stored as a column)
    # o_ref:  (Bt, 1, 2, d_model)   row 0 = mean, row 1 = std (lane = d_model)
    w1 = w1_ref[0]                      # [bn, d_model]
    b1 = b1_ref[0]                      # [bn, 1]
    w2 = w2_ref[0]                      # [bn, 1]
    d_model = x_ref.shape[2]

    # Bt is small (<= 8); whenever the per-row tile is large Bt == 1, so this
    # static unroll never holds many large live intermediates at once.
    for b in range(bt):
        x = x_ref[b, 0, :, :]                                             # [d_model, T]

        # k=1 Conv1d over channels.  With small d_model the MXU contraction
        # (K=d_model) is nearly empty, so use VPU broadcast-FMAs instead.
        if use_mxu:
            pre = jnp.dot(w1, x, preferred_element_type=jnp.float32)      # [bn, T]
        else:
            pre = w1[:, 0:1] * x[0:1, :]
            for d in range(1, d_model):
                pre = pre + w1[:, d:d + 1] * x[d:d + 1, :]                # [bn, T]
        h = jnp.tanh(pre + b1)                                            # [bn, T]

        # Second conv has a single output channel (M=1): VPU multiply +
        # sublane (XLU) reduce rather than a degenerate matmul.  Its bias b2
        # is omitted entirely: softmax over time is shift invariant.
        score = jnp.sum(w2 * h, axis=0, keepdims=True)                    # [1, T]

        # Softmax over time without materializing alpha = e / sum(e):
        # keep unnormalized e and rescale the reduced moments once.
        m = jnp.max(score, axis=-1, keepdims=True)                        # [1, 1]
        e = jnp.exp(score - m)                                            # [1, T]
        inv_s = pl.reciprocal(jnp.sum(e, axis=-1, keepdims=True), approx=False)

        ex = e * x                                                        # [d_model, T]
        mean = jnp.sum(ex, axis=-1, keepdims=True) * inv_s                # [d_model, 1]
        msq = jnp.sum(ex * x, axis=-1, keepdims=True) * inv_s             # [d_model, 1]
        std = jnp.sqrt(jnp.maximum(msq - mean * mean, 1e-7))              # [d_model, 1]

        stat = jnp.concatenate([mean, std], axis=-1)                      # [d_model, 2]
        o_ref[b, 0, :, :] = stat.T                                        # [2, d_model] lane-dense


def mhastp_forward(x, params, head_num):
    """params = (w1, b1, w2, b2) with shapes
       w1: [H, bn, d_model], b1: [H, bn, 1], w2: [H, 1, bn], b2: [H, 1, 1].
       b2 is accepted but unused (softmax over time is shift invariant)."""
    if x.ndim == 4:  # resnet-style (B, C, F, T) -> (B, C*F, T)
        x = x.reshape(x.shape[0], x.shape[1] * x.shape[2], x.shape[3])
    assert x.ndim == 3
    B, F, T = x.shape
    H = head_num
    assert F % H == 0
    d_model = F // H
    w1, b1, w2, _b2 = params
    bn = w1.shape[1]

    # Fold several batch rows into each grid step to amortize per-step
    # overhead.  Bt must divide B (so no HBM pad/copy of x is ever made) and
    # is capped so a double-buffered x tile + intermediates stay well inside
    # the scoped VMEM limit on every chip generation.
    per_row_bytes = d_model * T * 4
    cap = max(1, (4 << 20) // per_row_bytes)
    limit = min(B, 8, cap)
    Bt = 1
    for d in range(1, limit + 1):
        if B % d == 0:
            Bt = d

    xh = x.astype(jnp.float32).reshape(B, H, d_model, T)   # pure view, no HBM copy
    w2c = w2.astype(jnp.float32).reshape(H, bn, 1)         # second conv weight as a column

    kernel = functools.partial(_mhastp_kernel, bt=Bt, use_mxu=(d_model > 32))

    out = pl.pallas_call(
        kernel,
        out_shape=jax.ShapeDtypeStruct((B, H, 2, d_model), jnp.float32),
        grid_spec=pltpu.PrefetchScalarGridSpec(
            num_scalar_prefetch=0,
            # Head is the OUTER grid axis so the per-head weights stay
            # resident in VMEM across the inner batch sweep.
            grid=(H, B // Bt),
            in_specs=[
                pl.BlockSpec((Bt, 1, d_model, T), lambda h, b: (b, h, 0, 0)),
                pl.BlockSpec((1, bn, d_model), lambda h, b: (h, 0, 0)),
                pl.BlockSpec((1, bn, 1), lambda h, b: (h, 0, 0)),
                pl.BlockSpec((1, bn, 1), lambda h, b: (h, 0, 0)),
            ],
            out_specs=pl.BlockSpec((Bt, 1, 2, d_model), lambda h, b: (b, h, 0, 0)),
        ),
        compiler_params=pltpu.CompilerParams(
            dimension_semantics=("parallel", "parallel"),
            vmem_limit_bytes=48 << 20),
    )(xh, w1.astype(jnp.float32), b1.astype(jnp.float32), w2c)

    # (B, H, 2, d_model) -> (B, 2*F): per head [mean(d_model), std(d_model)],
    # concatenated over heads.  Pure reshape -- no wrapper transpose needed.
    return out.reshape(B, 2 * F)


def mhastp_ref(x, params, head_num):
    """Pure-JAX reference mirroring the PyTorch forward (b2 included)."""
    if x.ndim == 4:
        x = x.reshape(x.shape[0], x.shape[1] * x.shape[2], x.shape[3])
    B, F, T = x.shape
    d_model = F // head_num
    w1, b1, w2, b2 = params
    hp = jax.lax.Precision.HIGHEST
    outs = []
    for h in range(head_num):
        chunk = x[:, h * d_model:(h + 1) * d_model, :]                       # [B, dm, T]
        hid = jnp.tanh(jnp.einsum("od,bdt->bot", w1[h], chunk, precision=hp)
                       + b1[h].reshape(1, -1, 1))                            # [B, bn, T]
        score = (jnp.einsum("od,bdt->bot", w2[h], hid, precision=hp)
                 + b2[h].reshape(1, 1, 1))
        alpha = jax.nn.softmax(score, axis=-1)                               # [B, 1, T]
        mean = jnp.sum(alpha * chunk, axis=2)
        var = jnp.sum(alpha * chunk ** 2, axis=2) - mean ** 2
        std = jnp.sqrt(jnp.maximum(var, 1e-7))
        outs.append(jnp.concatenate([mean, std], axis=1))
    return jnp.concatenate(outs, axis=1)


if __name__ == "__main__":
    def make_params(key, head_num, bottleneck_dim, d_model):
        k = jax.random.split(key, 4)
        w1 = 0.1 * jax.random.normal(k[0], (head_num, bottleneck_dim, d_model), jnp.float32)
        b1 = 0.1 * jax.random.normal(k[1], (head_num, bottleneck_dim, 1), jnp.float32)
        w2 = 0.1 * jax.random.normal(k[2], (head_num, 1, bottleneck_dim), jnp.float32)
        b2 = 0.1 * jax.random.normal(k[3], (head_num, 1, 1), jnp.float32)
        return w1, b1, w2, b2

    key = jax.random.PRNGKey(0)
    H, bn = 2, 64                       # module defaults (layer_num fixed at 2)

    # Case 1: module-default small config -> VPU conv path (d_model=8),
    # ragged (non-128-multiple) time axis handled without any HBM padding.
    B, in_dim, T = 2, 16, 16
    kx, kp, key = jax.random.split(key, 3)
    x = jax.random.normal(kx, (B, in_dim, T), dtype=jnp.float32)
    params = make_params(kp, H, bn, in_dim // H)
    out = jax.block_until_ready(mhastp_forward(x, params, H))
    ref = mhastp_ref(x, params, H)
    assert out.shape == (B, 2 * in_dim), out.shape
    assert jnp.allclose(out, ref, atol=1e-4, rtol=1e-4), \
        f"case1 max abs diff {jnp.max(jnp.abs(out - ref))}"

    # Case 2: larger feature dim -> MXU conv path (d_model=64), ragged T.
    # Slightly looser tolerance to allow for MXU f32 pass decomposition.
    B2, in2, T2 = 4, 128, 50
    kx2, kp2 = jax.random.split(key, 2)
    x2 = jax.random.normal(kx2, (B2, in2, T2), dtype=jnp.float32)
    params2 = make_params(kp2, H, bn, in2 // H)
    out2 = jax.block_until_ready(mhastp_forward(x2, params2, H))
    ref2 = mhastp_ref(x2, params2, H)
    assert out2.shape == (B2, 2 * in2), out2.shape
    assert jnp.allclose(out2, ref2, atol=2e-3, rtol=2e-3), \
        f"case2 max abs diff {jnp.max(jnp.abs(out2 - ref2))}"

    print("KERNEL_OK")
</pallas_src>

<mosaic_0001>
module attributes {stable_mosaic.version = 11 : i64} {
  func.func @_mhastp_kernel(%arg0: i32, %arg1: i32, %arg2: memref<2x1x8x16xf32, #tpu.memory_space<vmem>>, %arg3: memref<1x64x8xf32, #tpu.memory_space<vmem>>, %arg4: memref<1x64x1xf32, #tpu.memory_space<vmem>>, %arg5: memref<1x64x1xf32, #tpu.memory_space<vmem>>, %arg6: memref<2x1x2x8xf32, #tpu.memory_space<vmem>>) attributes {dimension_semantics = [#tpu.dimension_semantics<parallel>, #tpu.dimension_semantics<parallel>], iteration_bounds = array<i64: 2, 1>, scalar_prefetch = 0 : i64, scratch_operands = 0 : i64, tpu.core_type = #tpu.core_type<tc>, window_params = [{transform_indices = @transform_0, window_bounds = array<i64: 2, 1, 8, 16>}, {transform_indices = @transform_1, window_bounds = array<i64: 1, 64, 8>}, {transform_indices = @transform_2, window_bounds = array<i64: 1, 64, 1>}, {transform_indices = @transform_3, window_bounds = array<i64: 1, 64, 1>}, {transform_indices = @transform_4, window_bounds = array<i64: 2, 1, 2, 8>}]} {
    %c0 = arith.constant 0 : index
    %c0_0 = arith.constant 0 : index
    %c0_1 = arith.constant 0 : index
    %0 = vector.load %arg3[%c0, %c0_0, %c0_1] : memref<1x64x8xf32, #tpu.memory_space<vmem>>, vector<1x64x8xf32>
    %1 = vector.shape_cast %0 : vector<1x64x8xf32> to vector<64x8xf32>
    %c0_2 = arith.constant 0 : index
    %c0_3 = arith.constant 0 : index
    %c0_4 = arith.constant 0 : index
    %2 = vector.load %arg4[%c0_2, %c0_3, %c0_4] : memref<1x64x1xf32, #tpu.memory_space<vmem>>, vector<1x64x1xf32>
    %3 = vector.shape_cast %2 : vector<1x64x1xf32> to vector<64x1xf32>
    %c0_5 = arith.constant 0 : index
    %c0_6 = arith.constant 0 : index
    %c0_7 = arith.constant 0 : index
    %4 = vector.load %arg5[%c0_5, %c0_6, %c0_7] : memref<1x64x1xf32, #tpu.memory_space<vmem>>, vector<1x64x1xf32>
    %5 = vector.shape_cast %4 : vector<1x64x1xf32> to vector<64x1xf32>
    %c0_8 = arith.constant 0 : index
    %c0_9 = arith.constant 0 : index
    %c0_10 = arith.constant 0 : index
    %c0_11 = arith.constant 0 : index
    %6 = vector.load %arg2[%c0_8, %c0_9, %c0_10, %c0_11] : memref<2x1x8x16xf32, #tpu.memory_space<vmem>>, vector<1x1x8x16xf32>
    %7 = vector.shape_cast %6 : vector<1x1x8x16xf32> to vector<8x16xf32>
    %8 = vector.extract_strided_slice %1 {offsets = [0, 0], sizes = [64, 1], strides = [1, 1]} : vector<64x8xf32> to vector<64x1xf32>
    %9 = vector.extract_strided_slice %7 {offsets = [0, 0], sizes = [1, 16], strides = [1, 1]} : vector<8x16xf32> to vector<1x16xf32>
    %10 = vector.broadcast %8 : vector<64x1xf32> to vector<64x16xf32>
    %11 = vector.broadcast %9 : vector<1x16xf32> to vector<64x16xf32>
    %12 = arith.mulf %10, %11 : vector<64x16xf32>
    %13 = vector.extract_strided_slice %1 {offsets = [0, 1], sizes = [64, 1], strides = [1, 1]} : vector<64x8xf32> to vector<64x1xf32>
    %14 = vector.extract_strided_slice %7 {offsets = [1, 0], sizes = [1, 16], strides = [1, 1]} : vector<8x16xf32> to vector<1x16xf32>
    %15 = vector.broadcast %13 : vector<64x1xf32> to vector<64x16xf32>
    %16 = vector.broadcast %14 : vector<1x16xf32> to vector<64x16xf32>
    %17 = arith.mulf %15, %16 : vector<64x16xf32>
    %18 = arith.addf %12, %17 : vector<64x16xf32>
    %19 = vector.extract_strided_slice %1 {offsets = [0, 2], sizes = [64, 1], strides = [1, 1]} : vector<64x8xf32> to vector<64x1xf32>
    %20 = vector.extract_strided_slice %7 {offsets = [2, 0], sizes = [1, 16], strides = [1, 1]} : vector<8x16xf32> to vector<1x16xf32>
    %21 = vector.broadcast %19 : vector<64x1xf32> to vector<64x16xf32>
    %22 = vector.broadcast %20 : vector<1x16xf32> to vector<64x16xf32>
    %23 = arith.mulf %21, %22 : vector<64x16xf32>
    %24 = arith.addf %18, %23 : vector<64x16xf32>
    %25 = vector.extract_strided_slice %1 {offsets = [0, 3], sizes = [64, 1], strides = [1, 1]} : vector<64x8xf32> to vector<64x1xf32>
    %26 = vector.extract_strided_slice %7 {offsets = [3, 0], sizes = [1, 16], strides = [1, 1]} : vector<8x16xf32> to vector<1x16xf32>
    %27 = vector.broadcast %25 : vector<64x1xf32> to vector<64x16xf32>
    %28 = vector.broadcast %26 : vector<1x16xf32> to vector<64x16xf32>
    %29 = arith.mulf %27, %28 : vector<64x16xf32>
    %30 = arith.addf %24, %29 : vector<64x16xf32>
    %31 = vector.extract_strided_slice %1 {offsets = [0, 4], sizes = [64, 1], strides = [1, 1]} : vector<64x8xf32> to vector<64x1xf32>
    %32 = vector.extract_strided_slice %7 {offsets = [4, 0], sizes = [1, 16], strides = [1, 1]} : vector<8x16xf32> to vector<1x16xf32>
    %33 = vector.broadcast %31 : vector<64x1xf32> to vector<64x16xf32>
    %34 = vector.broadcast %32 : vector<1x16xf32> to vector<64x16xf32>
    %35 = arith.mulf %33, %34 : vector<64x16xf32>
    %36 = arith.addf %30, %35 : vector<64x16xf32>
    %37 = vector.extract_strided_slice %1 {offsets = [0, 5], sizes = [64, 1], strides = [1, 1]} : vector<64x8xf32> to vector<64x1xf32>
    %38 = vector.extract_strided_slice %7 {offsets = [5, 0], sizes = [1, 16], strides = [1, 1]} : vector<8x16xf32> to vector<1x16xf32>
    %39 = vector.broadcast %37 : vector<64x1xf32> to vector<64x16xf32>
    %40 = vector.broadcast %38 : vector<1x16xf32> to vector<64x16xf32>
    %41 = arith.mulf %39, %40 : vector<64x16xf32>
    %42 = arith.addf %36, %41 : vector<64x16xf32>
    %43 = vector.extract_strided_slice %1 {offsets = [0, 6], sizes = [64, 1], strides = [1, 1]} : vector<64x8xf32> to vector<64x1xf32>
    %44 = vector.extract_strided_slice %7 {offsets = [6, 0], sizes = [1, 16], strides = [1, 1]} : vector<8x16xf32> to vector<1x16xf32>
    %45 = vector.broadcast %43 : vector<64x1xf32> to vector<64x16xf32>
    %46 = vector.broadcast %44 : vector<1x16xf32> to vector<64x16xf32>
    %47 = arith.mulf %45, %46 : vector<64x16xf32>
    %48 = arith.addf %42, %47 : vector<64x16xf32>
    %49 = vector.extract_strided_slice %1 {offsets = [0, 7], sizes = [64, 1], strides = [1, 1]} : vector<64x8xf32> to vector<64x1xf32>
    %50 = vector.extract_strided_slice %7 {offsets = [7, 0], sizes = [1, 16], strides = [1, 1]} : vector<8x16xf32> to vector<1x16xf32>
    %51 = vector.broadcast %49 : vector<64x1xf32> to vector<64x16xf32>
    %52 = vector.broadcast %50 : vector<1x16xf32> to vector<64x16xf32>
    %53 = arith.mulf %51, %52 : vector<64x16xf32>
    %54 = arith.addf %48, %53 : vector<64x16xf32>
    %55 = vector.broadcast %3 : vector<64x1xf32> to vector<64x16xf32>
    %56 = arith.addf %54, %55 : vector<64x16xf32>
    %57 = math.tanh %56 : vector<64x16xf32>
    %58 = vector.broadcast %5 : vector<64x1xf32> to vector<64x16xf32>
    %59 = arith.mulf %58, %57 : vector<64x16xf32>
    %cst = arith.constant dense<0.000000e+00> : vector<16xf32>
    %60 = vector.multi_reduction <add>, %59, %cst [0] : vector<64x16xf32> to vector<16xf32>
    %61 = vector.shape_cast %60 : vector<16xf32> to vector<1x16xf32>
    %cst_12 = arith.constant dense<0xFF800000> : vector<1xf32>
    %62 = vector.multi_reduction <maximumf>, %61, %cst_12 [1] : vector<1x16xf32> to vector<1xf32>
    %63 = vector.shape_cast %62 : vector<1xf32> to vector<1x1xf32>
    %64 = vector.broadcast %63 : vector<1x1xf32> to vector<1x16xf32>
    %65 = arith.subf %61, %64 : vector<1x16xf32>
    %66 = math.exp %65 : vector<1x16xf32>
    %cst_13 = arith.constant dense<0.000000e+00> : vector<1xf32>
    %67 = vector.multi_reduction <add>, %66, %cst_13 [1] : vector<1x16xf32> to vector<1xf32>
    %68 = vector.shape_cast %67 : vector<1xf32> to vector<1x1xf32>
    %69 = tpu.reciprocal %68 : vector<1x1xf32> -> vector<1x1xf32>
    %70 = vector.broadcast %66 : vector<1x16xf32> to vector<8x16xf32>
    %71 = arith.mulf %70, %7 : vector<8x16xf32>
    %cst_14 = arith.constant dense<0.000000e+00> : vector<8xf32>
    %72 = vector.multi_reduction <add>, %71, %cst_14 [1] : vector<8x16xf32> to vector<8xf32>
    %73 = vector.shape_cast %72 : vector<8xf32> to vector<8x1xf32>
    %74 = vector.broadcast %69 : vector<1x1xf32> to vector<8x1xf32>
    %75 = arith.mulf %73, %74 : vector<8x1xf32>
    %76 = arith.mulf %71, %7 : vector<8x16xf32>
    %cst_15 = arith.constant dense<0.000000e+00> : vector<8xf32>
    %77 = vector.multi_reduction <add>, %76, %cst_15 [1] : vector<8x16xf32> to vector<8xf32>
    %78 = vector.shape_cast %77 : vector<8xf32> to vector<8x1xf32>
    %79 = vector.broadcast %69 : vector<1x1xf32> to vector<8x1xf32>
    %80 = arith.mulf %78, %79 : vector<8x1xf32>
    %81 = arith.mulf %75, %75 : vector<8x1xf32>
    %82 = arith.subf %80, %81 : vector<8x1xf32>
    %cst_16 = arith.constant 1.000000e-07 : f32
    %83 = vector.broadcast %cst_16 : f32 to vector<8x1xf32>
    %84 = arith.maximumf %82, %83 : vector<8x1xf32>
    %85 = math.sqrt %84 : vector<8x1xf32>
    %86 = tpu.concatenate %75, %85 in 1 : vector<8x1xf32>, vector<8x1xf32> -> vector<8x2xf32>
    %87 = tpu.transpose %86, [1, 0] : vector<8x2xf32> -> vector<2x8xf32>
    %c0_17 = arith.constant 0 : index
    %c0_18 = arith.constant 0 : index
    %c0_19 = arith.constant 0 : index
    %c0_20 = arith.constant 0 : index
    %88 = vector.load %arg6[%c0_17, %c0_18, %c0_19, %c0_20] : memref<2x1x2x8xf32, #tpu.memory_space<vmem>>, vector<1x1x2x8xf32>
    %89 = vector.shape_cast %88 : vector<1x1x2x8xf32> to vector<2x8xf32>
    %90 = vector.shape_cast %87 : vector<2x8xf32> to vector<1x1x2x8xf32>
    tpu.vector_store %arg6[%c0_17, %c0_18, %c0_19, %c0_20], %90 {strides = array<i32>} : memref<2x1x2x8xf32, #tpu.memory_space<vmem>>, vector<1x1x2x8xf32>,
    %c1 = arith.constant 1 : index
    %c0_21 = arith.constant 0 : index
    %c0_22 = arith.constant 0 : index
    %c0_23 = arith.constant 0 : index
    %91 = vector.load %arg2[%c1, %c0_21, %c0_22, %c0_23] : memref<2x1x8x16xf32, #tpu.memory_space<vmem>>, vector<1x1x8x16xf32>
    %92 = vector.shape_cast %91 : vector<1x1x8x16xf32> to vector<8x16xf32>
    %93 = vector.extract_strided_slice %1 {offsets = [0, 0], sizes = [64, 1], strides = [1, 1]} : vector<64x8xf32> to vector<64x1xf32>
    %94 = vector.extract_strided_slice %92 {offsets = [0, 0], sizes = [1, 16], strides = [1, 1]} : vector<8x16xf32> to vector<1x16xf32>
    %95 = vector.broadcast %93 : vector<64x1xf32> to vector<64x16xf32>
    %96 = vector.broadcast %94 : vector<1x16xf32> to vector<64x16xf32>
    %97 = arith.mulf %95, %96 : vector<64x16xf32>
    %98 = vector.extract_strided_slice %1 {offsets = [0, 1], sizes = [64, 1], strides = [1, 1]} : vector<64x8xf32> to vector<64x1xf32>
    %99 = vector.extract_strided_slice %92 {offsets = [1, 0], sizes = [1, 16], strides = [1, 1]} : vector<8x16xf32> to vector<1x16xf32>
    %100 = vector.broadcast %98 : vector<64x1xf32> to vector<64x16xf32>
    %101 = vector.broadcast %99 : vector<1x16xf32> to vector<64x16xf32>
    %102 = arith.mulf %100, %101 : vector<64x16xf32>
    %103 = arith.addf %97, %102 : vector<64x16xf32>
    %104 = vector.extract_strided_slice %1 {offsets = [0, 2], sizes = [64, 1], strides = [1, 1]} : vector<64x8xf32> to vector<64x1xf32>
    %105 = vector.extract_strided_slice %92 {offsets = [2, 0], sizes = [1, 16], strides = [1, 1]} : vector<8x16xf32> to vector<1x16xf32>
    %106 = vector.broadcast %104 : vector<64x1xf32> to vector<64x16xf32>
    %107 = vector.broadcast %105 : vector<1x16xf32> to vector<64x16xf32>
    %108 = arith.mulf %106, %107 : vector<64x16xf32>
    %109 = arith.addf %103, %108 : vector<64x16xf32>
    %110 = vector.extract_strided_slice %1 {offsets = [0, 3], sizes = [64, 1], strides = [1, 1]} : vector<64x8xf32> to vector<64x1xf32>
    %111 = vector.extract_strided_slice %92 {offsets = [3, 0], sizes = [1, 16], strides = [1, 1]} : vector<8x16xf32> to vector<1x16xf32>
    %112 = vector.broadcast %110 : vector<64x1xf32> to vector<64x16xf32>
    %113 = vector.broadcast %111 : vector<1x16xf32> to vector<64x16xf32>
    %114 = arith.mulf %112, %113 : vector<64x16xf32>
    %115 = arith.addf %109, %114 : vector<64x16xf32>
    %116 = vector.extract_strided_slice %1 {offsets = [0, 4], sizes = [64, 1], strides = [1, 1]} : vector<64x8xf32> to vector<64x1xf32>
    %117 = vector.extract_strided_slice %92 {offsets = [4, 0], sizes = [1, 16], strides = [1, 1]} : vector<8x16xf32> to vector<1x16xf32>
    %118 = vector.broadcast %116 : vector<64x1xf32> to vector<64x16xf32>
    %119 = vector.broadcast %117 : vector<1x16xf32> to vector<64x16xf32>
    %120 = arith.mulf %118, %119 : vector<64x16xf32>
    %121 = arith.addf %115, %120 : vector<64x16xf32>
    %122 = vector.extract_strided_slice %1 {offsets = [0, 5], sizes = [64, 1], strides = [1, 1]} : vector<64x8xf32> to vector<64x1xf32>
    %123 = vector.extract_strided_slice %92 {offsets = [5, 0], sizes = [1, 16], strides = [1, 1]} : vector<8x16xf32> to vector<1x16xf32>
    %124 = vector.broadcast %122 : vector<64x1xf32> to vector<64x16xf32>
    %125 = vector.broadcast %123 : vector<1x16xf32> to vector<64x16xf32>
    %126 = arith.mulf %124, %125 : vector<64x16xf32>
    %127 = arith.addf %121, %126 : vector<64x16xf32>
    %128 = vector.extract_strided_slice %1 {offsets = [0, 6], sizes = [64, 1], strides = [1, 1]} : vector<64x8xf32> to vector<64x1xf32>
    %129 = vector.extract_strided_slice %92 {offsets = [6, 0], sizes = [1, 16], strides = [1, 1]} : vector<8x16xf32> to vector<1x16xf32>
    %130 = vector.broadcast %128 : vector<64x1xf32> to vector<64x16xf32>
    %131 = vector.broadcast %129 : vector<1x16xf32> to vector<64x16xf32>
    %132 = arith.mulf %130, %131 : vector<64x16xf32>
    %133 = arith.addf %127, %132 : vector<64x16xf32>
    %134 = vector.extract_strided_slice %1 {offsets = [0, 7], sizes = [64, 1], strides = [1, 1]} : vector<64x8xf32> to vector<64x1xf32>
    %135 = vector.extract_strided_slice %92 {offsets = [7, 0], sizes = [1, 16], strides = [1, 1]} : vector<8x16xf32> to vector<1x16xf32>
    %136 = vector.broadcast %134 : vector<64x1xf32> to vector<64x16xf32>
    %137 = vector.broadcast %135 : vector<1x16xf32> to vector<64x16xf32>
    %138 = arith.mulf %136, %137 : vector<64x16xf32>
    %139 = arith.addf %133, %138 : vector<64x16xf32>
    %140 = vector.broadcast %3 : vector<64x1xf32> to vector<64x16xf32>
    %141 = arith.addf %139, %140 : vector<64x16xf32>
    %142 = math.tanh %141 : vector<64x16xf32>
    %143 = vector.broadcast %5 : vector<64x1xf32> to vector<64x16xf32>
    %144 = arith.mulf %143, %142 : vector<64x16xf32>
    %cst_24 = arith.constant dense<0.000000e+00> : vector<16xf32>
    %145 = vector.multi_reduction <add>, %144, %cst_24 [0] : vector<64x16xf32> to vector<16xf32>
    %146 = vector.shape_cast %145 : vector<16xf32> to vector<1x16xf32>
    %cst_25 = arith.constant dense<0xFF800000> : vector<1xf32>
    %147 = vector.multi_reduction <maximumf>, %146, %cst_25 [1] : vector<1x16xf32> to vector<1xf32>
    %148 = vector.shape_cast %147 : vector<1xf32> to vector<1x1xf32>
    %149 = vector.broadcast %148 : vector<1x1xf32> to vector<1x16xf32>
    %150 = arith.subf %146, %149 : vector<1x16xf32>
    %151 = math.exp %150 : vector<1x16xf32>
    %cst_26 = arith.constant dense<0.000000e+00> : vector<1xf32>
    %152 = vector.multi_reduction <add>, %151, %cst_26 [1] : vector<1x16xf32> to vector<1xf32>
    %153 = vector.shape_cast %152 : vector<1xf32> to vector<1x1xf32>
    %154 = tpu.reciprocal %153 : vector<1x1xf32> -> vector<1x1xf32>
    %155 = vector.broadcast %151 : vector<1x16xf32> to vector<8x16xf32>
    %156 = arith.mulf %155, %92 : vector<8x16xf32>
    %cst_27 = arith.constant dense<0.000000e+00> : vector<8xf32>
    %157 = vector.multi_reduction <add>, %156, %cst_27 [1] : vector<8x16xf32> to vector<8xf32>
    %158 = vector.shape_cast %157 : vector<8xf32> to vector<8x1xf32>
    %159 = vector.broadcast %154 : vector<1x1xf32> to vector<8x1xf32>
    %160 = arith.mulf %158, %159 : vector<8x1xf32>
    %161 = arith.mulf %156, %92 : vector<8x16xf32>
    %cst_28 = arith.constant dense<0.000000e+00> : vector<8xf32>
    %162 = vector.multi_reduction <add>, %161, %cst_28 [1] : vector<8x16xf32> to vector<8xf32>
    %163 = vector.shape_cast %162 : vector<8xf32> to vector<8x1xf32>
    %164 = vector.broadcast %154 : vector<1x1xf32> to vector<8x1xf32>
    %165 = arith.mulf %163, %164 : vector<8x1xf32>
    %166 = arith.mulf %160, %160 : vector<8x1xf32>
    %167 = arith.subf %165, %166 : vector<8x1xf32>
    %cst_29 = arith.constant 1.000000e-07 : f32
    %168 = vector.broadcast %cst_29 : f32 to vector<8x1xf32>
    %169 = arith.maximumf %167, %168 : vector<8x1xf32>
    %170 = math.sqrt %169 : vector<8x1xf32>
    %171 = tpu.concatenate %160, %170 in 1 : vector<8x1xf32>, vector<8x1xf32> -> vector<8x2xf32>
    %172 = tpu.transpose %171, [1, 0] : vector<8x2xf32> -> vector<2x8xf32>
    %c1_30 = arith.constant 1 : index
    %c0_31 = arith.constant 0 : index
    %c0_32 = arith.constant 0 : index
    %c0_33 = arith.constant 0 : index
    %173 = vector.load %arg6[%c1_30, %c0_31, %c0_32, %c0_33] : memref<2x1x2x8xf32, #tpu.memory_space<vmem>>, vector<1x1x2x8xf32>
    %174 = vector.shape_cast %173 : vector<1x1x2x8xf32> to vector<2x8xf32>
    %175 = vector.shape_cast %172 : vector<2x8xf32> to vector<1x1x2x8xf32>
    tpu.vector_store %arg6[%c1_30, %c0_31, %c0_32, %c0_33], %175 {strides = array<i32>} : memref<2x1x2x8xf32, #tpu.memory_space<vmem>>, vector<1x1x2x8xf32>,
    return
  }
  func.func @transform_0(%arg0: i32, %arg1: i32) -> (i32, i32, i32, i32) {
    %c0_i32 = arith.constant 0 : i32
    %c0_i32_0 = arith.constant 0 : i32
    %c0_i32_1 = arith.constant 0 : i32
    return %arg1, %arg0, %c0_i32, %c0_i32_0 : i32, i32, i32, i32
  }
  func.func @transform_1(%arg0: i32, %arg1: i32) -> (i32, i32, i32) {
    %c0_i32 = arith.constant 0 : i32
    %c0_i32_0 = arith.constant 0 : i32
    %c0_i32_1 = arith.constant 0 : i32
    return %arg0, %c0_i32, %c0_i32_0 : i32, i32, i32
  }
  func.func @transform_2(%arg0: i32, %arg1: i32) -> (i32, i32, i32) {
    %c0_i32 = arith.constant 0 : i32
    %c0_i32_0 = arith.constant 0 : i32
    %c0_i32_1 = arith.constant 0 : i32
    return %arg0, %c0_i32, %c0_i32_0 : i32, i32, i32
  }
  func.func @transform_3(%arg0: i32, %arg1: i32) -> (i32, i32, i32) {
    %c0_i32 = arith.constant 0 : i32
    %c0_i32_0 = arith.constant 0 : i32
    %c0_i32_1 = arith.constant 0 : i32
    return %arg0, %c0_i32, %c0_i32_0 : i32, i32, i32
  }
  func.func @transform_4(%arg0: i32, %arg1: i32) -> (i32, i32, i32, i32) {
    %c0_i32 = arith.constant 0 : i32
    %c0_i32_0 = arith.constant 0 : i32
    %c0_i32_1 = arith.constant 0 : i32
    return %arg1, %arg0, %c0_i32, %c0_i32_0 : i32, i32, i32, i32
  }
}

</mosaic_0001>

<bundles_post_ra>
// kernel: tpu_custom_call.1
= control target key start
LH: loop header
LB: loop body
LE: loop exit
PB: predicated region body
PF: predicated region fallthrough
CT: control target
= control target key end

     0   :  { %9 = vsyncpa [#allocation4], 0  ;;  %s2242_s0 = inlined_call_operand.vmem [shape: f32[2,2,8,16], index: 0, kind: input, shape index: {}]   ;;  %s2243_s1 = inlined_call_operand.vmem [shape: f32[2,64,8], index: 1, kind: input, shape index: {}]   ;;  %s2244_s2 = inlined_call_operand.vmem [shape: f32[2,64,1], index: 2, kind: input, shape index: {}]   ;;  %s2245_s3 = inlined_call_operand.vmem [shape: f32[2,64,1], index: 3, kind: input, shape index: {}]   ;;  %s2246_s4 = inlined_call_operand.hbm [shape: f32[2,2,2,8], index: 4, kind: output, shape index: {}]  }
   0x1   :  { %11 = vsyncpa [#allocation4 + $0x1], 0  ;;  %s1618_s15 = smov 0   ;;  %s1620_s16 = smov 0  }
   0x2   :  { %s1622_s17 = smov 0   ;;  %s1624_s18 = smov 0  }
   0x3   :  { %s1626_s19 = smov 0   ;;  %s1628_s20 = smov 0  }
   0x4 LB: > { %s1335_s21 = sadd.s32 4294967295, %s1580_s20   ;;  %s1336_s22 = sadd.s32 4294967294, %s1580_s20   ;;  %s1580_s20 = sphi %s1628_s20, %s17_s20   ;;  %s1576_s19 = sphi %s1626_s19, %s2253_s19   ;;  %s1572_s18 = sphi %s1624_s18, %s2252_s18   ;;  %s1568_s17 = sphi %s1622_s17, %s2251_s17   ;;  %s1564_s16 = sphi %s1620_s16, %s2250_s16   ;;  %s1560_s15 = sphi %s1618_s15, %s2249_s15  }
   0x5   : > { %s29_s23 = sadd.s32 1, %s1576_s19  ;;  %s38_s24 = sadd.s32 1, %s1568_s17 }
   0x6   : > { %p31_p0 = scmp.ge.s32.totalorder %s29_s23, 2  ;;  %p45_p1 = scmp.ne.s32.totalorder %s1568_s17, %s1564_s16 }
   0x7   : > { %p46_p2 = scmp.eq.s32.totalorder %s1580_s20, 0  ;;  %p155_p3 = scmp.eq.s32.totalorder %s1335_s21, 1 }
   0x8   : > { %s2255_s23 = smov (%p31_p0, %s29_s23), 0  ;;  %p160_p6 = scmp.ne.s32.totalorder %s1564_s16, %s1560_s15 }
   0x9   : > { %p47_p4 = por %p46_p2, %p45_p1  ;;  %p1657_p5 = por %p155_p3, %p45_p1 }
   0xa   : > { %s34_s26 = ssub.s32 %s1576_s19, %s2255_s23  ;;  %p161_p8 = scmp.eq.s32.totalorder %s1336_s22, 1 }
   0xb   : > { %p36_p7 = scmp.eq.s32.totalorder %s34_s26, 0  ;;  %p1338_p10 = scmp.ge.s32.totalorder %s1580_s20, 2 }
   0xc   : > { %p1668_p9 = por %p161_p8, %p160_p6 }
   0xd   : > { %s1666_s27 = scalar_select %p36_p7, %s1568_s17, %s38_s24  }
   0xe   : > { %177 = sbr.rel (%p1338_p10) target bundleno = 25 (0x19), region = 16 }
  0x13   : > { %180 = sbr.rel (!%p47_p4) target bundleno = 25 (0x19), region = 20  ;;  %s182_s29 = sand.u32 (%p47_p4), 1, %s1568_s17  }
  0x14   : > { %s1340_s30 = sshll.u32 (%p47_p4), %s1576_s19, 3  ;;  %s1339_s5 = sshll.u32 (%p47_p4), %s182_s29, 4 }
  0x15   : > { %s189_s8 = scalar_lea.vmem (%p47_p4), %s2242_s0, %s1340_s30  ;;  %s184_s9 = scalar_lea.vmem (%p47_p4), [#allocation2], %s1339_s5 }
  0x16   : > { %v220_v0 = vld [vmem:[%s189_s8] sm:$0xff] (%p47_p4)  ;;  %v222_v1 = vld [vmem:[%s189_s8 + $0x10] sm:$0xff] (%p47_p4) }
  0x17   : > { %221 = vst [vmem:[%s184_s9] sm:$0xff] (%p47_p4), %v220_v0 }
  0x18   : > { %223 = vst [vmem:[%s184_s9 + $0x8] sm:$0xff] %v222_v1 }
  0x19 PF: > { %p1341_p11 = scmp.ge.s32.totalorder %s1580_s20, 1  ;;  %p252_p12 = scmp.lt.s32.totalorder %s1580_s20, 3 }
  0x1b   : > { %p253_p13 = pnand %p1341_p11, %p252_p12 }
  0x1c   : > { %p300_p0 = scmp.lt.s32.totalorder (!%p253_p13), %s1572_s18, 1  ;;  %s1752_s21 = sand.u32 (!%p253_p13), 1, %s1564_s16  }
  0x1d   : > { %256 = sbr.rel (%p253_p13) target bundleno = 871 (0x367), region = 70  ;;  %s1342_s22 = sshll.u32 (!%p253_p13), %s1752_s21, 4 }
  0x1e   : > { %s1762_s24 = scalar_lea.vmem (!%p253_p13), [#allocation2], %s1342_s22  ;;  %s1343_s8 = sshll.u32 (!%p253_p13), %s1752_s21, 2 }
  0x1f   : > { %s1353_s9 = sshll.u32 (!%p253_p13), %s1572_s18, 1  ;;  %s1522_s5 = scalar_lea.hbm (!%p253_p13), %s2246_s4, 8 }
  0x20   : > { %s1215_s13 = scalar_lea.hbm (!%p253_p13), %s2246_s4, %s1353_s9 }
  0x21   : > { %s1218_s22 = sshll.u32 (!%p253_p13), %s1215_s13, 4  ;;  %s1219_s22 = int_to_ptr.hbm [resolvable:$true] %s1218_s22 }
  0x22   : > { %v1582_v2 = vmov 1   ;;  %v1583_v3 = vmov 0   ;;  %s301_s10 = scalar_select %p300_p0, %s1572_s18, 1  ;;  %v1584_v12 = vmov 2   ;;  %v1585_v13 = vmov 3   ;;  %v1765_v24 = vld [vmem:[%s1762_s24] sm:$0xff] }
  0x23   : > { %1429 = vset.pattern.permute.xlu0 %v1582_v2  ;;  %1427 = vset.pattern.permute.xlu2 %v1583_v3  ;;  %v1586_v14 = vmov 4   ;;  %v1587_v15 = vmov 5   ;;  %v1588_v16 = vmov 6   ;;  %v1589_v19 = vmov 7   ;;  %v1768_v25 = vld [vmem:[%s1762_s24 + $0x8] sm:$0xff]  ;;  %s1516_s26 = sshra.s32 %s1219_s22, 4  ;;  %s1517_s26 = int_to_ptr.hbm [resolvable:$true] %s1516_s26 }
  0x24   : > { %1426 = vset.pattern.permute.xlu1 %v1583_v3  ;;  %s1686_s11 = sshll.u32 %s301_s10, 6  ;;  %v1772_v26 = vperm.slane %v1765_v24, 1  ;;  %v1775_v27 = vperm.slane %v1768_v25, 1  ;;  %v1781_v28 = vperm.slane %v1765_v24, 0  ;;  %v1784_v29 = vperm.slane %v1768_v25, 0  ;;  %s298_s10 = scalar_lea.vmem [#allocation3], %s1343_s8 }
  0x25   : > { %s304_s14 = scalar_lea.vmem %s2243_s1, %s1686_s11  ;;  %v1807_v48 = vperm.slane %v1765_v24, 2  ;;  %v1810_v49 = vperm.slane %v1768_v25, 2  ;;  %s1816_s30 = scalar_lea.vmem %s2244_s2, %s1686_s11  ;;  %vm837_vm0 = vcmask 130048   ;;  %vm907_vm9 = vcmask 7168  }
  0x26   : > { %v1692_v4 = vld [vmem:[%s304_s14 + $0x20] sm:$0xff]  ;;  %v1694_v5 = vld [vmem:[%s304_s14 + $0x10] sm:$0xff]  ;;  %v1696_v6 = vld [vmem:[%s304_s14 + $0x8] sm:$0xff]  ;;  %s1834_s7 = scalar_lea.vmem %s2245_s3, %s1686_s11  ;;  %vm941_vm14 = vcmask 58368   ;;  %s1518_s29 = scalar_lea.hbm %s1517_s26, 4 }
  0x27   : > { %363 = vperm.xlu2 %1427, %v1692_v4   ;;  %353 = vperm.xlu1 %1426, %v1694_v5   ;;  %v1701_v7 = vld [vmem:[%s304_s14 + $0x28] sm:$0xff]  ;;  %v1703_v8 = vld [vmem:[%s304_s14 + $0x18] sm:$0xff]  ;;  %v1705_v9 = vld [vmem:[%s304_s14 + $0x30] sm:$0xff]  ;;  %p1519_p1 = scmp.ne.s32.totalorder %s1517_s26, %s1518_s29  ;;  %p1523_p4 = scmp.lt.s32.totalorder %s1517_s26, %s2246_s4 }
  0x28   : > { %395 = vperm.xlu0 %1429, %v1696_v6   ;;  %v1710_v10 = vld [vmem:[%s304_s14 + $0x38] sm:$0xff]  ;;  %v1712_v11 = vld [vmem:[%s304_s14] sm:$0xff]  ;;  %s1216_s14 = sshll.u32 %s298_s10, 4  ;;  %p1524_p6 = scmp.lt.s32.totalorder %s1522_s5, %s1518_s29  ;;  %s1217_s14 = int_to_ptr.vmem [resolvable:$true] %s1216_s14 }
  0x29   : > { %v327_v59 = vld [vmem:[%s1816_s30 + $0x18] sm:$0xff]  ;;  %p1520_p2 = pnand %p1519_p1, %p1657_p5 }
  0x2a   : > { %p1525_p7 = por %p1524_p6, %p1523_p4 }
  0x2b   : > { %p1521_p3 = pneg %p1520_p2 }
  0x2d   : > { %p1526_p8 = pnand %p1525_p7, %p1521_p3 }
  0x2f   : > { %368 = vperm.xlu2 %1427, %v1701_v7   ;;  %358 = vperm.xlu1 %1426, %v1703_v8  }
  0x30   : > { %415 = vperm.xlu0 %1429, %v1705_v9  }
  0x37   : > { %1428 = vset.pattern.permute.xlu2 %v1582_v2  ;;  %378 = vperm.xlu1 %1426, %v1710_v10  }
  0x38   : > { %1432 = vset.pattern.permute.xlu0 %v1584_v12  ;;  %391 = vperm.xlu2 %1428, %v1712_v11  }
  0x39   : > { %444 = vperm.xlu0 %1432, %v1696_v6  }
  0x3f   : > { %1430 = vset.pattern.permute.xlu1 %v1582_v2 }
  0x40   : > { %399 = vperm.xlu1 %1430, %v1694_v5   ;;  %403 = vperm.xlu2 %1428, %v1703_v8  }
  0x41   : > { %464 = vperm.xlu0 %1432, %v1705_v9  }
  0x48   : > { %407 = vperm.xlu1 %1430, %v1692_v4   ;;  %411 = vperm.xlu2 %1428, %v1701_v7  }
  0x49   : > { %1435 = vset.pattern.permute.xlu0 %v1585_v13 }
  0x4a   : > { %493 = vperm.xlu0 %1435, %v1696_v6  }
  0x50   : > { %419 = vperm.xlu1 %1430, %v1710_v10   ;;  %1431 = vset.pattern.permute.xlu2 %v1584_v12 }
  0x51   : > { %440 = vperm.xlu2 %1431, %v1712_v11  }
  0x52   : > { %513 = vperm.xlu0 %1435, %v1705_v9  }
  0x58   : > { %1433 = vset.pattern.permute.xlu1 %v1584_v12 }
  0x59   : > { %448 = vperm.xlu1 %1433, %v1694_v5   ;;  %452 = vperm.xlu2 %1431, %v1703_v8  }
  0x5a   : > { %1438 = vset.pattern.permute.xlu0 %v1586_v14 }
  0x5b   : > { %542 = vperm.xlu0 %1438, %v1696_v6  }
  0x61   : > { %456 = vperm.xlu1 %1433, %v1692_v4   ;;  %460 = vperm.xlu2 %1431, %v1701_v7  }
  0x63   : > { %562 = vperm.xlu0 %1438, %v1705_v9  }
  0x69   : > { %468 = vperm.xlu1 %1433, %v1710_v10   ;;  %1434 = vset.pattern.permute.xlu2 %v1585_v13 }
  0x6a   : > { %489 = vperm.xlu2 %1434, %v1712_v11  }
  0x6b   : > { %1441 = vset.pattern.permute.xlu0 %v1587_v15 }
  0x6c   : > { %591 = vperm.xlu0 %1441, %v1696_v6  }
  0x71   : > { %1436 = vset.pattern.permute.xlu1 %v1585_v13 }
  0x72   : > { %497 = vperm.xlu1 %1436, %v1694_v5   ;;  %501 = vperm.xlu2 %1434, %v1703_v8  }
  0x74   : > { %611 = vperm.xlu0 %1441, %v1705_v9  }
  0x7a   : > { %505 = vperm.xlu1 %1436, %v1692_v4   ;;  %509 = vperm.xlu2 %1434, %v1701_v7  }
  0x7c   : > { %1444 = vset.pattern.permute.xlu0 %v1588_v16 }
  0x7d   : > { %640 = vperm.xlu0 %1444, %v1696_v6  }
  0x81   : > { %v1742_v17 = vpop.permute.xlu2 %363 }
  0x82   : > { %517 = vperm.xlu1 %1436, %v1710_v10   ;;  %1437 = vset.pattern.permute.xlu2 %v1586_v14  ;;  %v386_v1 = vmul.f32 %v1781_v28, %v1742_v17  ;;  %v950_v2 = vmul.f32 %v1784_v29, %v1742_v17 }
  0x83   : > { %538 = vperm.xlu2 %1437, %v1712_v11  }
  0x85   : > { %660 = vperm.xlu0 %1444, %v1705_v9  }
  0x89   : > { %v369_v18 = vpop.permute.xlu2 %368 }
  0x8a   : > { %1439 = vset.pattern.permute.xlu1 %v1586_v14  ;;  %v387_v37 = vmul.f32 %v1781_v28, %v369_v18  ;;  %v951_v38 = vmul.f32 %v1784_v29, %v369_v18 }
  0x8b   : > { %546 = vperm.xlu1 %1439, %v1694_v5   ;;  %550 = vperm.xlu2 %1437, %v1703_v8  }
  0x8d   : > { %1447 = vset.pattern.permute.xlu0 %v1589_v19 }
  0x8e   : > { %689 = vperm.xlu0 %1447, %v1696_v6  }
  0x92   : > { %v1754_v20 = vpop.permute.xlu2 %391 }
  0x93   : > { %554 = vperm.xlu1 %1439, %v1692_v4   ;;  %558 = vperm.xlu2 %1437, %v1701_v7  }
  0x96   : > { %701 = vperm.xlu0 %1447, %v1692_v4  }
  0x99   : > { %v354_v21 = vpop.permute.xlu1 %353 }
  0x9a   : > { %v404_v22 = vpop.permute.xlu2 %403  ;;  %v1760_v23 = vpop.permute.xlu0 %395  ;;  %v384_v51 = vmul.f32 %v1781_v28, %v354_v21  ;;  %v948_v52 = vmul.f32 %v1784_v29, %v354_v21  ;;  %v332_v21 = vld [vmem:[%s1834_s7] sm:$0xff] }
  0x9b   : > { %566 = vperm.xlu1 %1439, %v1710_v10   ;;  %1440 = vset.pattern.permute.xlu2 %v1587_v15  ;;  %v426_v30 = vmul.f32 %v1772_v26, %v404_v22  ;;  %v958_v31 = vmul.f32 %v1775_v27, %v404_v22 }
  0x9c   : > { %587 = vperm.xlu2 %1440, %v1712_v11  }
  0x9e   : > { %1451 = vset.pattern.permute.xlu0 %v1583_v3 }
  0x9f   : > { %343 = vperm.xlu0 %1451, %v1712_v11  }
  0xa1   : > { %v359_v32 = vpop.permute.xlu1 %358 }
  0xa2   : > { %v385_v33 = vmul.f32 %v1781_v28, %v359_v32  ;;  %v949_v34 = vmul.f32 %v1784_v29, %v359_v32  ;;  %v412_v35 = vpop.permute.xlu2 %411  ;;  %v1790_v36 = vpop.permute.xlu0 %415 }
  0xa3   : > { %v428_v39 = vmul.f32 %v1772_v26, %v412_v35  ;;  %v960_v40 = vmul.f32 %v1775_v27, %v412_v35  ;;  %1442 = vset.pattern.permute.xlu1 %v1587_v15 }
  0xa4   : > { %v434_v41 = vadd.f32 %v426_v30, %v385_v33  ;;  %v966_v42 = vadd.f32 %v958_v31, %v949_v34  ;;  %595 = vperm.xlu1 %1442, %v1694_v5   ;;  %599 = vperm.xlu2 %1440, %v1703_v8  }
  0xa5   : > { %v436_v43 = vadd.f32 %v428_v39, %v387_v37  ;;  %v968_v44 = vadd.f32 %v960_v40, %v951_v38  ;;  %v334_v39 = vld [vmem:[%s1834_s7 + $0x10] sm:$0xff] }
  0xa7   : > { %348 = vperm.xlu0 %1451, %v1696_v6  }
  0xa9   : > { %v379_v45 = vpop.permute.xlu1 %378 }
  0xaa   : > { %v389_v33 = vmul.f32 %v1781_v28, %v379_v45  ;;  %v953_v34 = vmul.f32 %v1784_v29, %v379_v45 }
  0xab   : > { %v1799_v46 = vpop.permute.xlu2 %440  ;;  %v1801_v47 = vpop.permute.xlu0 %444 }
  0xac   : > { %603 = vperm.xlu1 %1442, %v1692_v4   ;;  %607 = vperm.xlu2 %1440, %v1701_v7  }
  0xaf   : > { %373 = vperm.xlu0 %1451, %v1705_v9  }
  0xb2   : > { %v400_v50 = vpop.permute.xlu1 %399 }
  0xb3   : > { %v425_v53 = vmul.f32 %v1772_v26, %v400_v50  ;;  %v957_v54 = vmul.f32 %v1775_v27, %v400_v50  ;;  %v453_v55 = vpop.permute.xlu2 %452  ;;  %v1822_v56 = vpop.permute.xlu0 %464 }
  0xb4   : > { %v475_v57 = vmul.f32 %v1807_v48, %v453_v55  ;;  %v975_v58 = vmul.f32 %v1810_v49, %v453_v55  ;;  %615 = vperm.xlu1 %1442, %v1710_v10   ;;  %1443 = vset.pattern.permute.xlu2 %v1588_v16 }
  0xb5   : > { %v433_v60 = vadd.f32 %v425_v53, %v384_v51  ;;  %v965_v61 = vadd.f32 %v957_v54, %v948_v52  ;;  %636 = vperm.xlu2 %1443, %v1712_v11   ;;  %v336_v52 = vld [vmem:[%s1834_s7 + $0x20] sm:$0xff] }
  0xb6   : > { %v483_v62 = vadd.f32 %v475_v57, %v434_v41  ;;  %v983_v63 = vadd.f32 %v975_v58, %v966_v42  ;;  %v1862_v42 = vperm.slane %v1765_v24, 3 }
  0xb7   : > { %750 = vperm.xlu0 %1451, %v327_v59  }
  0xba   : > { %v408_v0 = vpop.permute.xlu1 %407 }
  0xbb   : > { %v427_v6 = vmul.f32 %v1772_v26, %v408_v0  ;;  %v959_v12 = vmul.f32 %v1775_v27, %v408_v0  ;;  %v461_v13 = vpop.permute.xlu2 %460 }
  0xbc   : > { %v477_v14 = vmul.f32 %v1807_v48, %v461_v13  ;;  %v977_v15 = vmul.f32 %v1810_v49, %v461_v13  ;;  %1445 = vset.pattern.permute.xlu1 %v1588_v16  ;;  %v1845_v18 = vpop.permute.xlu0 %493 }
  0xbd   : > { %v435_v22 = vadd.f32 %v427_v6, %v386_v1  ;;  %v967_v30 = vadd.f32 %v959_v12, %v950_v2  ;;  %644 = vperm.xlu1 %1445, %v1694_v5   ;;  %648 = vperm.xlu2 %1443, %v1703_v8   ;;  %v339_v12 = vld [vmem:[%s1834_s7 + $0x38] sm:$0xff] }
  0xbe   : > { %v485_v17 = vadd.f32 %v477_v14, %v436_v43  ;;  %v985_v31 = vadd.f32 %v977_v15, %v968_v44  ;;  %v1865_v43 = vperm.slane %v1768_v25, 3 }
  0xbf   : > { %791 = vperm.xlu0 %1451, %v332_v21  }
  0xc2   : > { %v420_v32 = vpop.permute.xlu1 %419 }
  0xc3   : > { %v430_v16 = vmul.f32 %v1772_v26, %v420_v32  ;;  %v962_v35 = vmul.f32 %v1775_v27, %v420_v32 }
  0xc4   : > { %v1854_v37 = vpop.permute.xlu2 %489  ;;  %v1856_v38 = vpop.permute.xlu0 %513 }
  0xc5   : > { %v438_v40 = vadd.f32 %v430_v16, %v389_v33  ;;  %v970_v41 = vadd.f32 %v962_v35, %v953_v34  ;;  %652 = vperm.xlu1 %1445, %v1692_v4   ;;  %656 = vperm.xlu2 %1443, %v1701_v7   ;;  %v324_v33 = vld [vmem:[%s1816_s30] sm:$0xff]  ;;  %v325_v16 = vld [vmem:[%s1816_s30 + $0x8] sm:$0xff] }
  0xc7   : > { %801 = vperm.xlu0 %1451, %v334_v39  }
  0xcb   : > { %v449_v44 = vpop.permute.xlu1 %448 }
  0xcc   : > { %v474_v45 = vmul.f32 %v1807_v48, %v449_v44  ;;  %v974_v50 = vmul.f32 %v1810_v49, %v449_v44  ;;  %v502_v51 = vpop.permute.xlu2 %501 }
  0xcd   : > { %v524_v53 = vmul.f32 %v1862_v42, %v502_v51  ;;  %v992_v4 = vmul.f32 %v1865_v43, %v502_v51  ;;  %664 = vperm.xlu1 %1445, %v1710_v10   ;;  %v1873_v54 = vpop.permute.xlu0 %542  ;;  %1446 = vset.pattern.permute.xlu2 %v1589_v19 }
  0xce   : > { %v482_v55 = vadd.f32 %v474_v45, %v433_v60  ;;  %v982_v57 = vadd.f32 %v974_v50, %v965_v61  ;;  %685 = vperm.xlu2 %1446, %v1712_v11  }
  0xcf   : > { %v532_v58 = vadd.f32 %v524_v53, %v483_v62  ;;  %v1000_v59 = vadd.f32 %v992_v4, %v983_v63  ;;  %811 = vperm.xlu0 %1451, %v336_v52  }
  0xd3   : > { %v457_v0 = vpop.permute.xlu1 %456 }
  0xd4   : > { %v476_v1 = vmul.f32 %v1807_v48, %v457_v0  ;;  %v976_v2 = vmul.f32 %v1810_v49, %v457_v0  ;;  %v510_v6 = vpop.permute.xlu2 %509 }
  0xd5   : > { %v526_v13 = vmul.f32 %v1862_v42, %v510_v6  ;;  %v994_v60 = vmul.f32 %v1865_v43, %v510_v6  ;;  %1448 = vset.pattern.permute.xlu1 %v1589_v19  ;;  %v1883_v61 = vpop.permute.xlu0 %562 }
  0xd6   : > { %v484_v62 = vadd.f32 %v476_v1, %v435_v22  ;;  %v984_v11 = vadd.f32 %v976_v2, %v967_v30  ;;  %693 = vperm.xlu1 %1448, %v1694_v5   ;;  %697 = vperm.xlu2 %1446, %v1703_v8   ;;  %v1898_v8 = vperm.slane %v1765_v24, 4  ;;  %v1901_v30 = vperm.slane %v1768_v25, 4 }
  0xd7   : > { %v534_v63 = vadd.f32 %v526_v13, %v485_v17  ;;  %v1002_v14 = vadd.f32 %v994_v60, %v985_v31  ;;  %826 = vperm.xlu0 %1451, %v339_v12   ;;  %v326_v31 = vld [vmem:[%s1816_s30 + $0x10] sm:$0xff] }
  0xdb   : > { %v469_v15 = vpop.permute.xlu1 %468 }
  0xdc   : > { %v479_v21 = vmul.f32 %v1807_v48, %v469_v15  ;;  %v979_v32 = vmul.f32 %v1810_v49, %v469_v15 }
  0xdd   : > { %v1890_v34 = vpop.permute.xlu2 %538 }
  0xde   : > { %v487_v35 = vadd.f32 %v479_v21, %v438_v40  ;;  %v987_v22 = vadd.f32 %v979_v32, %v970_v41  ;;  %1449 = vset.pattern.permute.xlu1 %v1583_v3  ;;  %v1894_v5 = vpop.permute.xlu0 %591  ;;  %1450 = vset.pattern.permute.xlu2 %v1583_v3 }
  0xdf   : > { %735 = vperm.xlu1 %1449, %v324_v33   ;;  %740 = vperm.xlu2 %1450, %v325_v16  }
  0xe4   : > { %v498_v17 = vpop.permute.xlu1 %497 }
  0xe5   : > { %v523_v39 = vmul.f32 %v1862_v42, %v498_v17  ;;  %v991_v40 = vmul.f32 %v1865_v43, %v498_v17  ;;  %v551_v41 = vpop.permute.xlu2 %550 }
  0xe6   : > { %v573_v44 = vmul.f32 %v1898_v8, %v551_v41  ;;  %v1009_v45 = vmul.f32 %v1901_v30, %v551_v41  ;;  %v1908_v50 = vpop.permute.xlu0 %611 }
  0xe7   : > { %v531_v51 = vadd.f32 %v523_v39, %v482_v55  ;;  %v999_v52 = vadd.f32 %v991_v40, %v982_v57  ;;  %745 = vperm.xlu1 %1449, %v326_v31   ;;  %1452 = vset.pattern.permute.xlu2 %v1589_v19 }
  0xe8   : > { %v581_v53 = vadd.f32 %v573_v44, %v532_v58  ;;  %v1017_v4 = vadd.f32 %v1009_v45, %v1000_v59  ;;  %705 = vperm.xlu2 %1452, %v1701_v7   ;;  %v328_v59 = vld [vmem:[%s1816_s30 + $0x20] sm:$0xff] }
  0xec   : > { %v506_v0 = vpop.permute.xlu1 %505 }
  0xed   : > { %v525_v1 = vmul.f32 %v1862_v42, %v506_v0  ;;  %v993_v2 = vmul.f32 %v1865_v43, %v506_v0  ;;  %v559_v6 = vpop.permute.xlu2 %558 }
  0xee   : > { %v575_v12 = vmul.f32 %v1898_v8, %v559_v6  ;;  %v1011_v13 = vmul.f32 %v1901_v30, %v559_v6 }
  0xef   : > { %v533_v55 = vadd.f32 %v525_v1, %v484_v62  ;;  %v1001_v57 = vadd.f32 %v993_v2, %v984_v11  ;;  %1453 = vset.pattern.permute.xlu1 %v1589_v19  ;;  %v1917_v58 = vpop.permute.xlu0 %640 }
  0xf0   : > { %v583_v60 = vadd.f32 %v575_v12, %v534_v63  ;;  %v1019_v7 = vadd.f32 %v1011_v13, %v1002_v14  ;;  %709 = vperm.xlu1 %1453, %v1705_v9   ;;  %1454 = vset.pattern.permute.xlu2 %v1583_v3  ;;  %v329_v63 = vld [vmem:[%s1816_s30 + $0x28] sm:$0xff]  ;;  %v1931_v9 = vperm.slane %v1765_v24, 5  ;;  %v1934_v14 = vperm.slane %v1768_v25, 5 }
  0xf1   : > { %755 = vperm.xlu2 %1454, %v328_v59   ;;  %v331_v59 = vld [vmem:[%s1816_s30 + $0x38] sm:$0xff] }
  0xf4   : > { %v518_v15 = vpop.permute.xlu1 %517 }
  0xf5   : > { %v528_v21 = vmul.f32 %v1862_v42, %v518_v15  ;;  %v996_v62 = vmul.f32 %v1865_v43, %v518_v15 }
  0xf6   : > { %v1924_v11 = vpop.permute.xlu2 %587 }
  0xf7   : > { %v536_v19 = vadd.f32 %v528_v21, %v487_v35  ;;  %v1004_v32 = vadd.f32 %v996_v62, %v987_v22  ;;  %v1926_v33 = vpop.permute.xlu0 %660  ;;  %v333_v35 = vld [vmem:[%s1834_s7 + $0x8] sm:$0xff] }
  0xf8   : > { %713 = vperm.xlu1 %1453, %v1710_v10   ;;  %v330_v10 = vld [vmem:[%s1816_s30 + $0x30] sm:$0xff] }
  0xf9   : > { %760 = vperm.xlu2 %1454, %v329_v63  }
  0xfd   : > { %v547_v16 = vpop.permute.xlu1 %546 }
  0xfe   : > { %v572_v17 = vmul.f32 %v1898_v8, %v547_v16  ;;  %v1008_v31 = vmul.f32 %v1901_v30, %v547_v16  ;;  %v600_v39 = vpop.permute.xlu2 %599 }
  0xff   : > { %v622_v22 = vmul.f32 %v1931_v9, %v600_v39  ;;  %v1026_v40 = vmul.f32 %v1934_v14, %v600_v39 }
 0x100   : > { %v580_v41 = vadd.f32 %v572_v17, %v531_v51  ;;  %v1016_v44 = vadd.f32 %v1008_v31, %v999_v52  ;;  %1455 = vset.pattern.permute.xlu1 %v1583_v3  ;;  %v1943_v45 = vpop.permute.xlu0 %689  ;;  %v335_v52 = vld [vmem:[%s1834_s7 + $0x18] sm:$0xff]  ;;  %v337_v31 = vld [vmem:[%s1834_s7 + $0x28] sm:$0xff] }
 0x101   : > { %v1945_v0 = vadd.f32 %v622_v22, %v581_v53  ;;  %v1947_v1 = vadd.f32 %v1026_v40, %v1017_v4  ;;  %796 = vperm.xlu1 %1455, %v333_v35   ;;  %765 = vperm.xlu2 %1454, %v330_v10  }
 0x105   : > { %v555_v2 = vpop.permute.xlu1 %554 }
 0x106   : > { %v574_v6 = vmul.f32 %v1898_v8, %v555_v2  ;;  %v1010_v12 = vmul.f32 %v1901_v30, %v555_v2  ;;  %v608_v13 = vpop.permute.xlu2 %607  ;;  %v472_v2 = vmul.f32 %v1807_v48, %v1799_v46 }
 0x107   : > { %v624_v51 = vmul.f32 %v1931_v9, %v608_v13  ;;  %v1028_v3 = vmul.f32 %v1934_v14, %v608_v13  ;;  %v989_v13 = vmul.f32 %v1865_v43, %v1854_v37 }
 0x108   : > { %v1955_v53 = vadd.f32 %v574_v6, %v533_v55  ;;  %v1957_v4 = vadd.f32 %v1010_v12, %v1001_v57  ;;  %v1959_v15 = vpop.permute.xlu0 %701  ;;  %v338_v55 = vld [vmem:[%s1834_s7 + $0x30] sm:$0xff]  ;;  %v521_v12 = vmul.f32 %v1862_v42, %v1854_v37 }
 0x109   : > { %v1961_v21 = vadd.f32 %v624_v51, %v583_v60  ;;  %v1963_v62 = vadd.f32 %v1028_v3, %v1019_v7  ;;  %770 = vperm.xlu1 %1455, %v331_v59   ;;  %806 = vperm.xlu2 %1454, %v335_v52   ;;  %v423_v60 = vmul.f32 %v1772_v26, %v1754_v20 }
 0x10a   : > { %v955_v7 = vmul.f32 %v1775_v27, %v1754_v20 }
 0x10d   : > { %v567_v63 = vpop.permute.xlu1 %566 }
 0x10e   : > { %v577_v16 = vmul.f32 %v1898_v8, %v567_v63  ;;  %v1013_v17 = vmul.f32 %v1901_v30, %v567_v63 }
 0x10f   : > { %v1968_v39 = vpop.permute.xlu2 %636 }
 0x110   : > { %v1971_v35 = vadd.f32 %v577_v16, %v536_v19  ;;  %v1973_v57 = vadd.f32 %v1013_v17, %v1004_v32  ;;  %v972_v19 = vmul.f32 %v1810_v49, %v1799_v46  ;;  %v570_v46 = vmul.f32 %v1898_v8, %v1890_v34 }
 0x111   : > { %v344_v22 = vpop.permute.xlu0 %343  ;;  %816 = vperm.xlu1 %1455, %v337_v31   ;;  %821 = vperm.xlu2 %1454, %v338_v55   ;;  %v1006_v31 = vmul.f32 %v1901_v30, %v1890_v34  ;;  %v1023_v34 = vmul.f32 %v1934_v14, %v1924_v11 }
 0x112   : > { %v382_v40 = vmul.f32 %v1781_v28, %v344_v22  ;;  %v946_v10 = vmul.f32 %v1784_v29, %v344_v22 }
 0x114   : > { %v431_v32 = vadd.f32 %v423_v60, %v382_v40  ;;  %v963_v6 = vadd.f32 %v955_v7, %v946_v10  ;;  %v424_v60 = vmul.f32 %v1772_v26, %v1760_v23  ;;  %v956_v7 = vmul.f32 %v1775_v27, %v1760_v23 }
 0x116   : > { %v480_v20 = vadd.f32 %v472_v2, %v431_v32  ;;  %v980_v59 = vadd.f32 %v972_v19, %v963_v6  ;;  %v596_v51 = vpop.permute.xlu1 %595  ;;  %v619_v2 = vmul.f32 %v1931_v9, %v1924_v11  ;;  %v473_v19 = vmul.f32 %v1807_v48, %v1801_v47 }
 0x117   : > { %v621_v3 = vmul.f32 %v1931_v9, %v596_v51  ;;  %v1025_v52 = vmul.f32 %v1934_v14, %v596_v51  ;;  %v1991_v17 = vpop.permute.xlu2 %648  ;;  %v973_v32 = vmul.f32 %v1810_v49, %v1801_v47  ;;  %v990_v11 = vmul.f32 %v1865_v43, %v1845_v18 }
 0x118   : > { %v529_v63 = vadd.f32 %v521_v12, %v480_v20  ;;  %v997_v16 = vadd.f32 %v989_v13, %v980_v59  ;;  %v522_v20 = vmul.f32 %v1862_v42, %v1845_v18  ;;  %v961_v47 = vmul.f32 %v1775_v27, %v1790_v36 }
 0x119   : > { %v1997_v55 = vadd.f32 %v621_v3, %v580_v41  ;;  %v1999_v37 = vadd.f32 %v1025_v52, %v1016_v44  ;;  %v349_v22 = vpop.permute.xlu0 %348  ;;  %v429_v52 = vmul.f32 %v1772_v26, %v1790_v36  ;;  %v1024_v26 = vmul.f32 %v1934_v14, %v1894_v5 }
 0x11a   : > { %v383_v40 = vmul.f32 %v1781_v28, %v349_v22  ;;  %v947_v10 = vmul.f32 %v1784_v29, %v349_v22  ;;  %v578_v41 = vadd.f32 %v570_v46, %v529_v63  ;;  %v1014_v44 = vadd.f32 %v1006_v31, %v997_v16 }
 0x11b   : > { %v571_v46 = vmul.f32 %v1898_v8, %v1873_v54  ;;  %v1007_v31 = vmul.f32 %v1901_v30, %v1873_v54 }
 0x11c   : > { %v432_v6 = vadd.f32 %v424_v60, %v383_v40  ;;  %v964_v23 = vadd.f32 %v956_v7, %v947_v10  ;;  %v2015_v12 = vadd.f32 %v619_v2, %v578_v41  ;;  %v2017_v13 = vadd.f32 %v1023_v34, %v1014_v44 }
 0x11d   : > { %v620_v60 = vmul.f32 %v1931_v9, %v1894_v5  ;;  %v478_v41 = vmul.f32 %v1807_v48, %v1822_v56  ;;  %v978_v5 = vmul.f32 %v1810_v49, %v1822_v56  ;;  %v576_v49 = vmul.f32 %v1898_v8, %v1883_v61 }
 0x11e   : > { %v481_v59 = vadd.f32 %v473_v19, %v432_v6  ;;  %v981_v51 = vadd.f32 %v973_v32, %v964_v23  ;;  %v604_v3 = vpop.permute.xlu1 %603  ;;  %v527_v32 = vmul.f32 %v1862_v42, %v1856_v38  ;;  %v1012_v56 = vmul.f32 %v1901_v30, %v1883_v61 }
 0x11f   : > { %v623_v63 = vmul.f32 %v1931_v9, %v604_v3  ;;  %v1027_v16 = vmul.f32 %v1934_v14, %v604_v3  ;;  %v2043_v40 = vpop.permute.xlu2 %656 }
 0x120   : > { %v530_v18 = vadd.f32 %v522_v20, %v481_v59  ;;  %v998_v22 = vadd.f32 %v990_v11, %v981_v51  ;;  %v1029_v51 = vmul.f32 %v1934_v14, %v1908_v50 }
 0x121   : > { %v2038_v27 = vadd.f32 %v623_v63, %v1955_v53  ;;  %v2041_v36 = vadd.f32 %v1027_v16, %v1957_v4  ;;  %v374_v7 = vpop.permute.xlu0 %373 }
 0x122   : > { %v388_v10 = vmul.f32 %v1781_v28, %v374_v7  ;;  %v952_v54 = vmul.f32 %v1784_v29, %v374_v7  ;;  %v579_v2 = vadd.f32 %v571_v46, %v530_v18  ;;  %v1015_v34 = vadd.f32 %v1007_v31, %v998_v22 }
 0x123   : > { %v995_v28 = vmul.f32 %v1865_v43, %v1856_v38  ;;  %v625_v43 = vmul.f32 %v1931_v9, %v1908_v50  ;;  %v2088_v50 = vperm.slane %v1765_v24, 6  ;;  %v2094_v22 = vperm.slane %v1765_v24, 7 }
 0x124   : > { %v437_v53 = vadd.f32 %v429_v52, %v388_v10  ;;  %v969_v44 = vadd.f32 %v961_v47, %v952_v54  ;;  %v2051_v19 = vadd.f32 %v620_v60, %v579_v2  ;;  %v2053_v4 = vadd.f32 %v1024_v26, %v1015_v34 }
 0x125   : > { %v671_v60 = vmul.f32 %v2088_v50, %v1991_v17  ;;  %v668_v10 = vmul.f32 %v2088_v50, %v1968_v39  ;;  %v2101_v54 = vperm.slane %v1768_v25, 7 }
 0x126   : > { %v486_v29 = vadd.f32 %v478_v41, %v437_v53  ;;  %v986_v6 = vadd.f32 %v978_v5, %v969_v44  ;;  %v616_v23 = vpop.permute.xlu1 %615  ;;  %v669_v44 = vmul.f32 %v2088_v50, %v1917_v58 }
 0x127   : > { %v626_v48 = vmul.f32 %v1931_v9, %v616_v23  ;;  %v1030_v20 = vmul.f32 %v1934_v14, %v616_v23  ;;  %v2091_v14 = vperm.slane %v1768_v25, 6  ;;  %v679_v5 = vadd.f32 %v671_v60, %v1945_v0 }
 0x128   : > { %v535_v11 = vadd.f32 %v527_v32, %v486_v29  ;;  %v1003_v59 = vadd.f32 %v995_v28, %v986_v6  ;;  %v686_v8 = vpop.permute.xlu2 %685 }
 0x129   : > { %v2066_v42 = vadd.f32 %v626_v48, %v1971_v35  ;;  %v2069_v38 = vadd.f32 %v1030_v20, %v1973_v57  ;;  %v751_v26 = vpop.permute.xlu0 %750  ;;  %v1043_v2 = vmul.f32 %v2091_v14, %v1991_v17  ;;  %v1040_v24 = vmul.f32 %v2091_v14, %v1968_v39 }
 0x12a   : > { %v584_v3 = vadd.f32 %v576_v49, %v535_v11  ;;  %v1020_v52 = vadd.f32 %v1012_v56, %v1003_v59  ;;  %v717_v41 = vmul.f32 %v2094_v22, %v686_v8  ;;  %v1057_v25 = vmul.f32 %v2101_v54, %v686_v8 }
 0x12b   : > { %v676_v17 = vadd.f32 %v668_v10, %v2015_v12  ;;  %v1041_v39 = vmul.f32 %v2091_v14, %v1917_v58  ;;  %v1051_v29 = vadd.f32 %v1043_v2, %v1947_v1  ;;  %v1048_v49 = vadd.f32 %v1040_v24, %v2017_v13 }
 0x12c   : > { %v2075_v47 = vadd.f32 %v625_v43, %v584_v3  ;;  %v2077_v61 = vadd.f32 %v1029_v51, %v1020_v52  ;;  %v718_v12 = vmul.f32 %v2094_v22, %v1943_v45  ;;  %v677_v59 = vadd.f32 %v669_v44, %v2051_v19 }
 0x12d   : > { %v725_v20 = vadd.f32 %v717_v41, %v676_v17  ;;  %v1065_v51 = vadd.f32 %v1057_v25, %v1048_v49  ;;  %v1058_v52 = vmul.f32 %v2101_v54, %v1943_v45  ;;  %v1061_v19 = vmul.f32 %v2101_v54, %v1959_v15 }
 0x12e   : > { %v1045_v17 = vmul.f32 %v2091_v14, %v2043_v40 }
 0x12f   : > { %v645_v30 = vpop.permute.xlu1 %644 }
 0x130   : > { %v698_v63 = vpop.permute.xlu2 %697  ;;  %v670_v32 = vmul.f32 %v2088_v50, %v645_v30  ;;  %v1042_v0 = vmul.f32 %v2091_v14, %v645_v30 }
 0x131   : > { %v720_v34 = vmul.f32 %v2094_v22, %v698_v63  ;;  %v1060_v53 = vmul.f32 %v2101_v54, %v698_v63  ;;  %v792_v30 = vpop.permute.xlu0 %791  ;;  %v1049_v63 = vadd.f32 %v1041_v39, %v2053_v4 }
 0x132   : > { %v678_v1 = vadd.f32 %v670_v32, %v1997_v55  ;;  %v1050_v13 = vadd.f32 %v1042_v0, %v1999_v37  ;;  %v1046_v32 = vmul.f32 %v2091_v14, %v1926_v33 }
 0x133   : > { %v728_v6 = vadd.f32 %v720_v34, %v679_v5  ;;  %v1068_v56 = vadd.f32 %v1060_v53, %v1051_v29  ;;  %v726_v34 = vadd.f32 %v718_v12, %v677_v59  ;;  %v1066_v24 = vadd.f32 %v1058_v52, %v1049_v63 }
 0x135   : > { %v776_v8 = vadd.f32 %v751_v26, %v728_v6  ;;  %v1076_v10 = vadd.f32 %v1068_v56, %v751_v26  ;;  %v674_v26 = vmul.f32 %v2088_v50, %v1926_v33  ;;  %v1053_v56 = vadd.f32 %v1045_v17, %v1963_v62 }
 0x137   : > { %v653_v35 = vpop.permute.xlu1 %652 }
 0x138   : > { %v672_v23 = vmul.f32 %v2088_v50, %v653_v35  ;;  %v1044_v11 = vmul.f32 %v2091_v14, %v653_v35  ;;  %v721_v35 = vmul.f32 %v2094_v22, %v1959_v15 }
 0x139   : > { %v2081_v57 = vpop.permute.xlu2 %740  ;;  %v802_v29 = vpop.permute.xlu0 %801 }
 0x13a   : > { %v1052_v2 = vadd.f32 %v1044_v11, %v2041_v36  ;;  %v774_v41 = vadd.f32 %v2081_v57, %v726_v34  ;;  %v1074_v15 = vadd.f32 %v1066_v24, %v2081_v57 }
 0x13c   : > { %v1069_v36 = vadd.f32 %v1061_v19, %v1052_v2 }
 0x13f   : > { %v2079_v16 = vpop.permute.xlu1 %664 }
 0x140   : > { %v1047_v33 = vmul.f32 %v2091_v14, %v2079_v16 }
 0x141   : > { %v812_v34 = vpop.permute.xlu0 %811 }
 0x142   : > { %v2083_v31 = vpop.permute.xlu2 %705  ;;  %v1055_v59 = vadd.f32 %v1047_v33, %v2069_v38 }
 0x143   : > { %v722_v0 = vmul.f32 %v2094_v22, %v2083_v31 }
 0x148   : > { %v694_v46 = vpop.permute.xlu1 %693 }
 0x149   : > { %v719_v48 = vmul.f32 %v2094_v22, %v694_v46  ;;  %v1059_v58 = vmul.f32 %v2101_v54, %v694_v46  ;;  %v680_v46 = vadd.f32 %v672_v23, %v2038_v27  ;;  %v675_v23 = vmul.f32 %v2088_v50, %v2079_v16 }
 0x14b   : > { %v2085_v18 = vpop.permute.xlu2 %755  ;;  %v727_v60 = vadd.f32 %v719_v48, %v678_v1  ;;  %v1067_v45 = vadd.f32 %v1059_v58, %v1050_v13  ;;  %v729_v5 = vadd.f32 %v721_v35, %v680_v46  ;;  %v1054_v1 = vadd.f32 %v1046_v32, %v2077_v61 }
 0x14c   : > { %v1077_v44 = vadd.f32 %v1069_v36, %v2085_v18 }
 0x14d   : > { %v777_v53 = vadd.f32 %v2085_v18, %v729_v5 }
 0x151   : > { %v736_v9 = vpop.permute.xlu1 %735 }
 0x152   : > { %v773_v43 = vadd.f32 %v736_v9, %v725_v20  ;;  %v1073_v55 = vadd.f32 %v1065_v51, %v736_v9  ;;  %v673_v9 = vmul.f32 %v2088_v50, %v2043_v40  ;;  %v682_v40 = vadd.f32 %v674_v26, %v2075_v47 }
 0x153   : > { %v2116_v28 = vpop.permute.xlu2 %760  ;;  %v683_v47 = vadd.f32 %v675_v23, %v2066_v42 }
 0x154   : > { %1456 = vtanh.f32 %v773_v43  ;;  %v681_v39 = vadd.f32 %v673_v9, %v1961_v21  ;;  %v1062_v21 = vmul.f32 %v2101_v54, %v2083_v31 }
 0x155   : > { %1458 = vtanh.f32 %v776_v8 }
 0x156   : > { %1460 = vtanh.f32 %v1073_v55  ;;  %v730_v58 = vadd.f32 %v722_v0, %v681_v39 }
 0x157   : > { %1462 = vtanh.f32 %v1076_v10 }
 0x158   : > { %v778_v51 = vadd.f32 %v2116_v28, %v730_v58  ;;  %v827_v58 = vpop.permute.xlu0 %826 }
 0x159   : > { %v746_v7 = vpop.permute.xlu1 %745 }
 0x15a   : > { %v775_v37 = vadd.f32 %v746_v7, %v727_v60  ;;  %v1075_v4 = vadd.f32 %v1067_v45, %v746_v7  ;;  %v1457_v25 = vpop.eup %1456 }
 0x15b   : > { %v2142_v27 = vpop.permute.xlu2 %765  ;;  %v1459_v57 = vpop.eup %1458  ;;  %v829_v49 = vmul.f32 %v1457_v25, %v792_v30 }
 0x15c   : > { %1464 = vtanh.f32 %v775_v37  ;;  %v1461_v18 = vpop.eup %1460 }
 0x15d   : > { %1466 = vtanh.f32 %v1075_v4  ;;  %v1463_v48 = vpop.eup %1462  ;;  %v1089_v16 = vmul.f32 %v1461_v18, %v792_v30  ;;  %v838_v62 = vsel %vm837_vm0, %v829_v49, 0.0 }
 0x15e   : > { %1468 = vtanh.f32 %v774_v41 }
 0x15f   : > { %1470 = vtanh.f32 %v1074_v15  ;;  %v1097_v60 = vsel %vm837_vm0, %v1089_v16, 0.0 }
 0x160   : > { %1472 = vtanh.f32 %v777_v53 }
 0x161   : > { %1474 = vtanh.f32 %v1077_v44 }
 0x162   : > { %v710_v3 = vpop.permute.xlu1 %709  ;;  %v1465_v12 = vpop.eup %1464  ;;  %1476 = vtanh.f32 %v778_v51 }
 0x163   : > { %v723_v6 = vmul.f32 %v2094_v22, %v710_v3  ;;  %v1063_v20 = vmul.f32 %v2101_v54, %v710_v3  ;;  %v1467_v11 = vpop.eup %1466  ;;  %v807_v31 = vpop.permute.xlu2 %806  ;;  %v1070_v3 = vadd.f32 %v1062_v21, %v1053_v56  ;;  %v831_v63 = vmul.f32 %v1465_v12, %v802_v29 }
 0x164   : > { %v1469_v14 = vpop.eup %1468  ;;  %v1091_v35 = vmul.f32 %v1467_v11, %v802_v29  ;;  %v832_v55 = vmul.f32 %v1459_v57, %v807_v31  ;;  %v1092_v38 = vmul.f32 %v1463_v48, %v807_v31 }
 0x165   : > { %v731_v50 = vadd.f32 %v723_v6, %v682_v40  ;;  %v1471_v43 = vpop.eup %1470  ;;  %v1071_v52 = vadd.f32 %v1063_v20, %v1054_v1  ;;  %v1078_v37 = vadd.f32 %v1070_v3, %v2116_v28  ;;  %v841_v15 = vsel %vm837_vm0, %v831_v63, 0.0 }
 0x166   : > { %v1473_v8 = vpop.eup %1472  ;;  %v1100_v36 = vsel %vm837_vm0, %v1091_v35, 0.0  ;;  %v1102_v53 = vsel %vm837_vm0, %v1092_v38, 0.0 }
 0x167   : > { %v1475_v46 = vpop.eup %1474  ;;  %v779_v42 = vadd.f32 %v2142_v27, %v731_v50  ;;  %v1079_v24 = vadd.f32 %v1071_v52, %v2142_v27  ;;  %v833_v5 = vmul.f32 %v1473_v8, %v812_v34 }
 0x168   : > { %v1093_v9 = vmul.f32 %v1475_v46, %v812_v34  ;;  %v1477_v6 = vpop.eup %1476 }
 0x169   : > { %1478 = vtanh.f32 %v779_v42  ;;  %v845_v57 = vsel %vm837_vm0, %v833_v5, 0.0 }
 0x16a   : > { %v714_v7 = vpop.permute.xlu1 %713  ;;  %1480 = vtanh.f32 %v1079_v24  ;;  %v1104_v39 = vsel %vm837_vm0, %v1093_v9, 0.0 }
 0x16b   : > { %v724_v19 = vmul.f32 %v2094_v22, %v714_v7  ;;  %v1064_v10 = vmul.f32 %v2101_v54, %v714_v7  ;;  %v843_v22 = vsel %vm837_vm0, %v832_v55, 0.0  ;;  %1482 = vtanh.f32 %v1078_v37  ;;  %v822_v40 = vpop.permute.xlu2 %821 }
 0x16d   : > { %v732_v7 = vadd.f32 %v724_v19, %v683_v47  ;;  %v1072_v28 = vadd.f32 %v1064_v10, %v1055_v59 }
 0x16f   : > { %v1479_v18 = vpop.eup %1478 }
 0x170   : > { %v1481_v23 = vpop.eup %1480  ;;  %v835_v20 = vmul.f32 %v1479_v18, %v822_v40 }
 0x171   : > { %v1483_v33 = vpop.eup %1482  ;;  %v1095_v49 = vmul.f32 %v1481_v23, %v822_v40 }
 0x172   : > { %v849_v31 = vsel %vm837_vm0, %v835_v20, 0.0 }
 0x173   : > { %v797_v13 = vpop.permute.xlu1 %796 }
 0x174   : > { %v830_v61 = vmul.f32 %v1469_v14, %v797_v13  ;;  %v1090_v30 = vmul.f32 %v1471_v43, %v797_v13  ;;  %v1108_v43 = vsel %vm837_vm0, %v1095_v49, 0.0 }
 0x176   : > { %v839_v2 = vsel %vm837_vm0, %v830_v61, 0.0  ;;  %v1098_v45 = vsel %vm837_vm0, %v1090_v30, 0.0 }
 0x177   : > { %v840_v4 = vadd.f32 %v839_v2, %v838_v62  ;;  %v1099_v41 = vadd.f32 %v1098_v45, %v1097_v60 }
 0x179   : > { %v842_v54 = vadd.f32 %v841_v15, %v840_v4  ;;  %v1101_v26 = vadd.f32 %v1100_v36, %v1099_v41 }
 0x17b   : > { %v771_v27 = vpop.permute.xlu1 %770  ;;  %v844_v44 = vadd.f32 %v843_v22, %v842_v54  ;;  %v1103_v25 = vadd.f32 %v1102_v53, %v1101_v26  ;;  %v1500_v26 = vld [vmem:[%s1762_s24] sm:$0xff] }
 0x17c   : > { %v780_v32 = vadd.f32 %v771_v27, %v732_v7  ;;  %v1080_v17 = vadd.f32 %v1072_v28, %v771_v27  ;;  %v1501_v28 = vld [vmem:[%s1762_s24 + $0x8] sm:$0xff]  ;;  %s1202_s24 = scalar_lea.sflag [#allocation4], %s1752_s21 }
 0x17d   : > { %v846_v29 = vadd.f32 %v845_v57, %v844_v44  ;;  %v1105_v0 = vadd.f32 %v1104_v39, %v1103_v25 }
 0x17e   : > { %1484 = vtanh.f32 %v780_v32 }
 0x17f   : > { %1486 = vtanh.f32 %v1080_v17 }
 0x183   : > { %v817_v48 = vpop.permute.xlu1 %816 }
 0x184   : > { %v1485_v21 = vpop.eup %1484  ;;  %v834_v12 = vmul.f32 %v1477_v6, %v817_v48  ;;  %v1094_v56 = vmul.f32 %v1483_v33, %v817_v48 }
 0x185   : > { %v1487_v11 = vpop.eup %1486  ;;  %v836_v50 = vmul.f32 %v1485_v21, %v827_v58 }
 0x186   : > { %v1096_v1 = vmul.f32 %v1487_v11, %v827_v58  ;;  %v847_v16 = vsel %vm837_vm0, %v834_v12, 0.0  ;;  %v1106_v14 = vsel %vm837_vm0, %v1094_v56, 0.0 }
 0x187   : > { %v848_v47 = vadd.f32 %v847_v16, %v846_v29  ;;  %v1107_v59 = vadd.f32 %v1106_v14, %v1105_v0  ;;  %v851_v13 = vsel %vm837_vm0, %v836_v50, 0.0 }
 0x188   : > { %v1110_v52 = vsel %vm837_vm0, %v1096_v1, 0.0 }
 0x189   : > { %v850_v51 = vadd.f32 %v849_v31, %v848_v47  ;;  %v1109_v3 = vadd.f32 %v1108_v43, %v1107_v59 }
 0x18b   : > { %v1111_v62 = vadd.f32 %v1110_v52, %v1109_v3  ;;  %v852_v8 = vadd.f32 %v851_v13, %v850_v51 }
 0x18d   : > { %v1112_v63 = vrot.slane %v1111_v62, 4  ;;  %v853_v35 = vrot.slane %v852_v8, 4 }
 0x18f   : > { %v1113_v61 = vadd.f32 %v1112_v63, %v1111_v62  ;;  %v854_v30 = vadd.f32 %v853_v35, %v852_v8 }
 0x191   : > { %v1114_v46 = vrot.slane %v1113_v61, 2  ;;  %v855_v42 = vrot.slane %v854_v30, 2 }
 0x193   : > { %v1115_v55 = vadd.f32 %v1114_v46, %v1113_v61  ;;  %v856_v38 = vadd.f32 %v855_v42, %v854_v30 }
 0x195   : > { %v1116_v60 = vrot.slane %v1115_v55, 1  ;;  %v857_v19 = vrot.slane %v856_v38, 1 }
 0x197   : > { %v1117_v10 = vadd.f32 %v1116_v60, %v1115_v55  ;;  %v858_v2 = vadd.f32 %v857_v19, %v856_v38 }
 0x199   : > { %v1118_v45 = vsel %vm837_vm0, %v1117_v10, -inf  ;;  %v859_v34 = vsel %vm837_vm0, %v858_v2, -inf }
 0x19a   : > { %1119 = vmax.xlane.f32.xlu2 %v1118_v45  ;;  %860 = vmax.xlane.f32.xlu1 %v859_v34 }
 0x20d   : > { %v1120_v37 = vpop.xlane.xlu2 %1119  ;;  %v861_v24 = vpop.xlane.xlu1 %860 }
 0x20e   : > { %v1121_v4 = vsub.f32 %v1117_v10, %v1120_v37  ;;  %v862_v41 = vsub.f32 %v858_v2, %v861_v24 }
 0x210   : > { %v1122_v5 = vmul.f32 1.442695, %v1121_v4  ;;  %v863_v9 = vmul.f32 1.442695, %v862_v41 }
 0x212   : > { %1488 = vpow2.f32 %v1122_v5 }
 0x213   : > { %1490 = vpow2.f32 %v863_v9 }
 0x218   : > { %v1489_v15 = vpop.eup %1488 }
 0x219   : > { %v1491_v36 = vpop.eup %1490  ;;  %v1124_v22 = vsel %vm837_vm0, %v1489_v15, 0.0  ;;  %v1141_v27 = vmul.f32 %v1501_v28, %v1489_v15 }
 0x21a   : > { %1125 = vadd.xlane.f32.xlu2 %v1124_v22  ;;  %v865_v54 = vsel %vm837_vm0, %v1491_v36, 0.0  ;;  %v882_v53 = vmul.f32 %v1500_v26, %v1491_v36 }
 0x21b   : > { %866 = vadd.xlane.f32.xlu0 %v865_v54  ;;  %v1146_v25 = vmul.f32 %v1501_v28, %v1141_v27  ;;  %v1142_v32 = vsel %vm837_vm0, %v1141_v27, 0.0 }
 0x21c   : > { %v883_v7 = vsel %vm837_vm0, %v882_v53, 0.0  ;;  %v887_v44 = vmul.f32 %v1500_v26, %v882_v53 }
 0x21d   : > { %884 = vadd.xlane.f32.xlu1 %v883_v7  ;;  %v1147_v57 = vsel %vm837_vm0, %v1146_v25, 0.0 }
 0x21e   : > { %v888_v17 = vsel %vm837_vm0, %v887_v44, 0.0 }
 0x222   : > { %1143 = vadd.xlane.f32.xlu2 %v1142_v32 }
 0x223   : > { %889 = vadd.xlane.f32.xlu0 %v888_v17 }
 0x225   : > { %1148 = vadd.xlane.f32.xlu1 %v1147_v57 }
 0x28d   : > { %v1126_v39 = vpop.xlane.xlu2 %1125 }
 0x28e   : > { %1492 = vrcp.f32 %v1126_v39  ;;  %v867_v29 = vpop.xlane.xlu0 %866  ;;  %v1138_v21 = vand.u32 2147483648, %v1126_v39  ;;  %v1136_v12 = vand.u32 2147483647, %v1126_v39  ;;  %vm1132_vm3 = vweird.f32 %v1126_v39 }
 0x28f   : > { %1494 = vrcp.f32 %v867_v29  ;;  %v879_v20 = vand.u32 2147483648, %v867_v29  ;;  %v877_v11 = vand.u32 2147483647, %v867_v29  ;;  %vm873_vm4 = vweird.f32 %v867_v29 }
 0x290   : > { %v885_v33 = vpop.xlane.xlu1 %884  ;;  %v1139_v1 = vor.u32 1.1754944e-38, %v1138_v21  ;;  %vm1137_vm7 = vcmp.eq.f32.partialorder %v1136_v12, 8.507059e+37 }
 0x291   : > { %v880_v16 = vor.u32 1.1754944e-38, %v879_v20  ;;  %vm878_vm8 = vcmp.eq.f32.partialorder %v877_v11, 8.507059e+37 }
 0x294   : > { %v1493_v0 = vpop.eup %1492 }
 0x295   : > { %v1495_v6 = vpop.eup %1494  ;;  %v1128_v18 = vmul.f32 %v1493_v0, %v1126_v39  ;;  %vm1133_vm1 = vweird.f32 %v1493_v0  ;;  %v1144_v31 = vpop.xlane.xlu2 %1143 }
 0x296   : > { %v869_v23 = vmul.f32 %v1495_v6, %v867_v29  ;;  %vm874_vm2 = vweird.f32 %v1495_v6  ;;  %vm1134_vm5 = vmor %vm1132_vm3, %vm1133_vm1  ;;  %v890_v62 = vpop.xlane.xlu0 %889 }
 0x297   : > { %v1129_v40 = vsub.f32 1.0, %v1128_v18  ;;  %vm875_vm6 = vmor %vm873_vm4, %vm874_vm2 }
 0x298   : > { %v870_v48 = vsub.f32 1.0, %v869_v23  ;;  %v1149_v52 = vpop.xlane.xlu1 %1148 }
 0x299   : > { %v1130_v49 = vmul.f32 %v1493_v0, %v1129_v40 }
 0x29a   : > { %v871_v56 = vmul.f32 %v1495_v6, %v870_v48 }
 0x29b   : > { %v1131_v58 = vadd.f32 %v1493_v0, %v1130_v49 }
 0x29c   : > { %v872_v50 = vadd.f32 %v1495_v6, %v871_v56 }
 0x29d   : > { %v1135_v14 = vsel %vm1134_vm5, %v1493_v0, %v1131_v58 }
 0x29e   : > { %v876_v47 = vsel %vm875_vm6, %v1495_v6, %v872_v50  ;;  %v1140_v59 = vsel %vm1137_vm7, %v1139_v1, %v1135_v14 }
 0x29f   : > { %v881_v43 = vsel %vm878_vm8, %v880_v16, %v876_v47  ;;  %v1145_v51 = vmul.f32 %v1144_v31, %v1140_v59  ;;  %v1150_v8 = vmul.f32 %v1149_v52, %v1140_v59 }
 0x2a0   : > { %v886_v3 = vmul.f32 %v885_v33, %v881_v43  ;;  %v891_v35 = vmul.f32 %v890_v62, %v881_v43 }
 0x2a1   : > { %v1151_v13 = vmul.f32 %v1145_v51, %v1145_v51 }
 0x2a2   : > { %v892_v63 = vmul.f32 %v886_v3, %v886_v3 }
 0x2a3   : > { %v1152_v61 = vsub.f32 %v1150_v8, %v1151_v13 }
 0x2a4   : > { %v893_v30 = vsub.f32 %v891_v35, %v892_v63 }
 0x2a5   : > { %v1153_v46 = vmax.f32 %v1152_v61, 1e-07 }
 0x2a6   : > { %v894_v42 = vmax.f32 %v893_v30, 1e-07 }
 0x2a7   : > { %1496 = vrsqrt.f32 %v1153_v46  ;;  %vm1161_vm10 = vcmp.eq.f32.partialorder %v1153_v46, inf  ;;  %v1164_v9 = vand.u32 2147483648, %v1153_v46  ;;  %vm1163_vm11 = vcmp.eq.f32.partialorder %v1153_v46, 0.0 }
 0x2a8   : > { %1498 = vrsqrt.f32 %v894_v42  ;;  %vm902_vm12 = vcmp.eq.f32.partialorder %v894_v42, inf  ;;  %v905_v22 = vand.u32 2147483648, %v894_v42  ;;  %vm904_vm13 = vcmp.eq.f32.partialorder %v894_v42, 0.0 }
 0x2ad   : > { %v1497_v55 = vpop.eup %1496 }
 0x2ae   : > { %v1499_v38 = vpop.eup %1498  ;;  %v1155_v60 = vmul.f32 %v1497_v55, %v1153_v46 }
 0x2af   : > { %v896_v19 = vmul.f32 %v1499_v38, %v894_v42 }
 0x2b0   : > { %v1156_v10 = vmul.f32 %v1497_v55, %v1155_v60 }
 0x2b1   : > { %v897_v2 = vmul.f32 %v1499_v38, %v896_v19 }
 0x2b2   : > { %v1157_v45 = vmul.f32 0.5, %v1156_v10 }
 0x2b3   : > { %v898_v34 = vmul.f32 0.5, %v897_v2 }
 0x2b4   : > { %v1158_v37 = vsub.f32 1.5, %v1157_v45 }
 0x2b5   : > { %v899_v24 = vsub.f32 1.5, %v898_v34 }
 0x2b6   : > { %v1159_v4 = vmul.f32 %v1497_v55, %v1158_v37 }
 0x2b7   : > { %v900_v41 = vmul.f32 %v1499_v38, %v899_v24 }
 0x2b8   : > { %v1160_v5 = vmul.f32 %v1159_v4, %v1153_v46 }
 0x2b9   : > { %v901_v15 = vmul.f32 %v900_v41, %v894_v42 }
 0x2ba   : > { %v1162_v36 = vsel %vm1161_vm10, %v1153_v46, %v1160_v5 }
 0x2bb   : > { %v1165_v54 = vsel %vm1163_vm11, %v1164_v9, %v1162_v36  ;;  %v903_v26 = vsel %vm902_vm12, %v894_v42, %v901_v15 }
 0x2bc   : > { %v1166_v53 = vsel %vm907_vm9, %v1145_v51, %v1165_v54  ;;  %v906_v7 = vsel %vm904_vm13, %v905_v22, %v903_v26 }
 0x2bd   : > { %1167 = vxpose.xlu0.b32.start.end [1/1] (short) (narrow) %v1166_v53, 8  ;;  %v908_v28 = vsel %vm907_vm9, %v886_v3, %v906_v7 }
 0x2be   : > { %909 = vxpose.xlu2.b32.start.end [1/1] (short) (narrow) %v908_v28, 8 }
 0x357   : > { %v925_v27 = vpop.trf.xlu2 }
 0x358   : > { %942 = vst.msk [vmem:[%s298_s10] sm:$0x3] %vm941_vm14, %v925_v27 }
 0x361   : > { %v1183_v44 = vpop.trf.xlu0 }
 0x362   : > { %1351 = vst.msk [vmem:[%s298_s10 + $0x2] sm:$0x3] %vm941_vm14, %v1183_v44 }
 0x363   : > { %1529 = shalt.err (!%p1526_p8)
}
 0x364   : > { %s1590_s21 = smov 32   ;;  %s1591_s8 = smov 64  }
 0x365   : > { %s1592_s9 = smov 2  }
 0x366   : > { %1359 = dma.vmem_to_hbm [thread:$0]  (%p1657_p5), %s1217_s14, 64, %s1219_s22, %s1202_s24, %s1590_s21, %s1591_s8, %s1592_s9  }
 0x367 PF: > { %s1233_s10 = sand.u32 1, %s1560_s15   ;;  %p1362_p11 = pnand %p1338_p10, %p1668_p9 }
 0x368   : > { %s1234_s11 = scalar_lea.sflag [#allocation4], %s1233_s10 }
 0x369   : > { %p1363_p12 = pneg %p1362_p11 }
 0x36b   : > { %1555 = dma.done.wait (%p1363_p12), %s1234_s11, 64  }
 0x36c   : > { %1557 = vsyncadd (%p1363_p12), %s1234_s11, 4294967232  ;;  %s17_s20 = sadd.s32 1, %s1580_s20   ;;  %s2249_s15 = smov %s1564_s16 }
 0x36d   : > { %p14_p13 = scmp.ge.s32.totalorder %s17_s20, 4   ;;  %s2250_s16 = smov %s1568_s17 }
 0x36e   : > { %s2251_s17 = smov %s1666_s27  ;;  %s2252_s18 = smov %s1576_s19 }
 0x36f   : > { %s2253_s19 = smov %s2255_s23  ;;  %16 = sbr.rel (!%p14_p13) target bundleno = 4 (0x4), region = 125 }
 0x374   :  { %1240 = vsyncpa [#allocation4], 1 }
 0x375   :  { %1242 = vsyncpa [#allocation4 + $0x1], 1 }

</bundles_post_ra>
